<compile_context>
chip_gen: v6e
topology: v6e:2x2x1
jax: 0.10.0
libtpu: 0.0.40
codegen_flags: <defaults>
</compile_context>

<pallas_src>
import functools
import math

import jax
import jax.numpy as jnp
from jax import lax
from jax.experimental import pallas as pl
from jax.experimental.pallas import tpu as pltpu

# ----- synthetic GPT-2 config (small shapes, same structure as HF GPT2Model) -----
N_LAYER = 2
N_HEAD = 4
N_EMBD = 32
HEAD_DIM = N_EMBD // N_HEAD
FFN = 4 * N_EMBD
VOCAB = 64
N_POS = 64
NULL_IDX = 0          # dict.null_idx
START_IDX = 1         # dict.start_idx
LN_EPS = 1e-5         # python float (kernels must not capture jnp arrays)
NEG_INF = -1e9        # python float
_GELU_C = math.sqrt(2.0 / math.pi)


# ----------------------------- shared math helpers -----------------------------
def _layer_norm(x, g, b):
    mu = jnp.mean(x, axis=-1, keepdims=True)
    var = jnp.mean((x - mu) * (x - mu), axis=-1, keepdims=True)
    return (x - mu) * lax.rsqrt(var + LN_EPS) * g + b


def _gelu_new(x):
    # GPT-2 "gelu_new"
    return 0.5 * x * (1.0 + jnp.tanh(_GELU_C * (x + 0.044715 * x * x * x)))


# ------------------------- fused GPT-2 transformer kernel -------------------------
def gpt2_layer_kernel(h_ref, kmask_ref,
                      wqkv_ref, wproj_ref, wfc_ref, bfc_ref, wmlp_ref,
                      small_ref, lnf_ref,
                      out_ref, kv_ref,
                      h_scr):
    """grid = (batch_row [parallel], layer [arbitrary]).

    The (Tp, E) activation slab is resident in VMEM scratch across the layer axis;
    per-layer weights are streamed by BlockSpec double-buffering.
    """
    layer = pl.program_id(1)

    # layer 0: load this batch row's embedded activations into the resident scratch
    @pl.when(layer == 0)
    def _():
        h_scr[...] = h_ref[0]

    sm = small_ref[0]                              # (9, E) packed small params, one DMA
    ln1_g, ln1_b = sm[0:1, :], sm[1:2, :]
    ln2_g, ln2_b = sm[2:3, :], sm[3:4, :]
    b_q, b_k, b_v = sm[4:5, :], sm[5:6, :], sm[6:7, :]
    b_pr, b_ml = sm[7:8, :], sm[8:9, :]

    h = h_scr[...]                                 # (Tp, E) f32
    Tp = h.shape[0]

    # ---- attention: LN -> fused QKV (single (E, 3E) bf16 MXU push) ----
    x = _layer_norm(h, ln1_g, ln1_b).astype(jnp.bfloat16)
    qkv = jnp.dot(x, wqkv_ref[0], preferred_element_type=jnp.float32)      # (Tp, 3E)
    q = qkv[:, :N_EMBD] + b_q                      # 1/sqrt(Dh) already folded into W_q/b_q
    k = qkv[:, N_EMBD:2 * N_EMBD] + b_k
    v = qkv[:, 2 * N_EMBD:] + b_v

    # present K/V: one combined bf16 slab per (layer, row) -> fewer, wider stores
    kv_ref[0, 0] = jnp.concatenate([k, v], axis=-1).astype(jnp.bfloat16)

    # causal + key-padding additive mask built in-kernel (no (B,Tp,Tp) HBM input)
    causal = (lax.broadcasted_iota(jnp.int32, (Tp, Tp), 0)
              >= lax.broadcasted_iota(jnp.int32, (Tp, Tp), 1))
    mask_add = jnp.where(causal, kmask_ref[0], NEG_INF)                    # (Tp, Tp)

    # per-head attention. dot_general contracts the head dim of both operands so no
    # explicit transposes are issued around the MXU; at Dh=8 the per-head push count is
    # unavoidable for the toy config.
    # TODO(synk): at real GPT-2 sizes batch heads with an einsum + flash-style KV tiling.
    ctx_heads = []
    for hd in range(N_HEAD):
        hs = slice(hd * HEAD_DIM, (hd + 1) * HEAD_DIM)
        s = lax.dot_general(q[:, hs], k[:, hs],
                            (((1,), (1,)), ((), ())),
                            preferred_element_type=jnp.float32)            # (Tp, Tp)
        s = s + mask_add
        s = s - jnp.max(s, axis=-1, keepdims=True)
        p = jnp.exp(s)
        p = p * pl.reciprocal(jnp.sum(p, axis=-1, keepdims=True), approx=True)  # EUP
        ctx_heads.append(jnp.dot(p, v[:, hs], preferred_element_type=jnp.float32))
    ctx = jnp.concatenate(ctx_heads, axis=-1)                              # (Tp, E)

    # single output projection per (row, layer)
    h = h + jnp.dot(ctx.astype(jnp.bfloat16), wproj_ref[0],
                    preferred_element_type=jnp.float32) + b_pr

    # ---- MLP (gelu_new) ----
    x2 = _layer_norm(h, ln2_g, ln2_b).astype(jnp.bfloat16)
    ff = _gelu_new(jnp.dot(x2, wfc_ref[0],
                           preferred_element_type=jnp.float32) + bfc_ref[0])
    h = h + jnp.dot(ff.astype(jnp.bfloat16), wmlp_ref[0],
                    preferred_element_type=jnp.float32) + b_ml

    h_scr[...] = h

    # last layer: fused final LayerNorm + hidden-state writeback
    @pl.when(layer == pl.num_programs(1) - 1)
    def _():
        out_ref[0] = _layer_norm(h, lnf_ref[0:1, :], lnf_ref[1:2, :])


def _transformer_pallas(params, h_emb, key_valid):
    """Run the fused transformer. h_emb: (B, Tp, E) f32, key_valid: (B, Tp) bool."""
    B, Tp, _ = h_emb.shape
    # additive key-padding mask row (0 / NEG_INF); causal part is built in-kernel
    kmask = jnp.where(key_valid, 0.0, NEG_INF).astype(jnp.float32)[:, None, :]  # (B,1,Tp)

    flops = B * N_LAYER * (
        2 * Tp * N_EMBD * 3 * N_EMBD                 # fused QKV
        + 2 * N_HEAD * 2 * Tp * Tp * HEAD_DIM        # scores + context
        + 2 * Tp * N_EMBD * N_EMBD                   # output projection
        + 2 * 2 * Tp * N_EMBD * FFN)                 # MLP up + down
    transcendentals = B * N_LAYER * (N_HEAD * Tp * Tp + Tp * FFN)
    bytes_accessed = (
        h_emb.size * 4 + kmask.size * 4
        + params['w_qkv'].size * 2 + params['w_proj'].size * 2
        + params['w_fc'].size * 2 + params['w_mlp'].size * 2
        + params['b_fc'].size * 4 + params['small'].size * 4 + params['lnf'].size * 4
        + B * Tp * N_EMBD * 4                        # hidden-state output (f32)
        + N_LAYER * B * Tp * 2 * N_EMBD * 2)         # combined bf16 presents

    out, kv = pl.pallas_call(
        gpt2_layer_kernel,
        out_shape=(
            jax.ShapeDtypeStruct((B, Tp, N_EMBD), jnp.float32),
            jax.ShapeDtypeStruct((N_LAYER, B, Tp, 2 * N_EMBD), jnp.bfloat16),
        ),
        grid_spec=pltpu.PrefetchScalarGridSpec(
            num_scalar_prefetch=0,
            grid=(B, N_LAYER),
            in_specs=[
                pl.BlockSpec((1, Tp, N_EMBD), lambda b, l: (b, 0, 0)),       # h_emb
                pl.BlockSpec((1, 1, Tp), lambda b, l: (b, 0, 0)),            # key mask
                pl.BlockSpec((1, N_EMBD, 3 * N_EMBD), lambda b, l: (l, 0, 0)),  # W_qkv
                pl.BlockSpec((1, N_EMBD, N_EMBD), lambda b, l: (l, 0, 0)),   # W_proj
                pl.BlockSpec((1, N_EMBD, FFN), lambda b, l: (l, 0, 0)),      # W_fc
                pl.BlockSpec((1, 1, FFN), lambda b, l: (l, 0, 0)),           # b_fc
                pl.BlockSpec((1, FFN, N_EMBD), lambda b, l: (l, 0, 0)),      # W_mlp
                pl.BlockSpec((1, 9, N_EMBD), lambda b, l: (l, 0, 0)),        # small slab
                pl.BlockSpec((2, N_EMBD), lambda b, l: (0, 0)),              # final LN
            ],
            out_specs=[
                pl.BlockSpec((1, Tp, N_EMBD), lambda b, l: (b, 0, 0)),       # hidden
                pl.BlockSpec((1, 1, Tp, 2 * N_EMBD), lambda b, l: (l, b, 0, 0)),  # K|V
            ],
            scratch_shapes=[pltpu.VMEM((Tp, N_EMBD), jnp.float32)],          # resident h
        ),
        compiler_params=pltpu.CompilerParams(
            dimension_semantics=("parallel", "arbitrary"),
            vmem_limit_bytes=32 * 1024 * 1024,
        ),
        cost_estimate=pl.CostEstimate(flops=flops, transcendentals=transcendentals,
                                      bytes_accessed=bytes_accessed),
    )(h_emb, kmask, params['w_qkv'], params['w_proj'], params['w_fc'],
      params['b_fc'], params['w_mlp'], params['small'], params['lnf'])
    return out, kv


# ------------------------------- GPT2Decoder.forward ------------------------------
def gpt2_decoder_forward(params, input_ids, encoder_state, add_start_token=False):
    """incr_state is None path of GPT2Decoder.forward."""
    B, L_in = input_ids.shape

    # model_input = cat([encoder_state, input], dim=-1)
    model_input = jnp.concatenate([encoder_state, input_ids], axis=-1)       # (B, T)
    T = model_input.shape[1]
    attention_mask = model_input != NULL_IDX
    position_ids = jnp.clip(
        jnp.cumsum(attention_mask.astype(jnp.int32), axis=-1) - 1, 0, None)
    tokens = jnp.clip(model_input, 0, None)

    # pad sequence length to a multiple of 8 (sublane alignment); pads are NULL/masked
    Tp = ((T + 7) // 8) * 8
    pad = Tp - T
    tokens = jnp.pad(tokens, ((0, 0), (0, pad)))
    position_ids = jnp.pad(position_ids, ((0, 0), (0, pad)))
    key_valid = jnp.pad(attention_mask, ((0, 0), (0, pad)))                  # (B, Tp)

    # embeddings (gather = glue, stays in plain JAX)
    h_emb = (params['wte'][tokens] + params['wpe'][position_ids]).astype(jnp.float32)

    out, kv = _transformer_pallas(params, h_emb, key_valid)

    hidden = out[:, :T]                                                      # (B, T, E)

    # presents: combined bf16 (L, B, Tp, 2E) -> per-layer (B, H, T, Dh) (layout plumbing)
    k_all = kv[:, :, :T, :N_EMBD].reshape(N_LAYER, B, T, N_HEAD, HEAD_DIM)
    v_all = kv[:, :, :T, N_EMBD:].reshape(N_LAYER, B, T, N_HEAD, HEAD_DIM)
    k_all = jnp.transpose(k_all, (0, 1, 3, 2, 4))
    v_all = jnp.transpose(v_all, (0, 1, 3, 2, 4))
    # NOTE: presents stay bf16 for writeback bandwidth; downstream incremental decoding
    # sees reduced-precision K/V.
    new_incr_state = [(k_all[l], v_all[l]) for l in range(N_LAYER)]

    # output = hidden_states[:, -input.size(1) - 1 + int(add_start_token):]
    start = max(T - (L_in + 1 - int(add_start_token)), 0)
    output = hidden[:, start:]

    # output[i, input.size(1) - lengths[i]] = output[i, 0]
    lengths = jnp.sum(input_ids != NULL_IDX, axis=-1)
    idx = L_in - lengths
    output = jax.vmap(lambda o, j: o.at[j].set(o[0]))(output, idx)

    return output, new_incr_state


# ----------------------- pure-JAX reference (numerics check) ----------------------
def gpt2_decoder_forward_ref(params, input_ids, encoder_state, add_start_token=False):
    B, L_in = input_ids.shape
    model_input = jnp.concatenate([encoder_state, input_ids], axis=-1)
    T = model_input.shape[1]
    attention_mask = model_input != NULL_IDX
    position_ids = jnp.clip(
        jnp.cumsum(attention_mask.astype(jnp.int32), axis=-1) - 1, 0, None)
    tokens = jnp.clip(model_input, 0, None)
    Tp = ((T + 7) // 8) * 8
    pad = Tp - T
    tokens = jnp.pad(tokens, ((0, 0), (0, pad)))
    position_ids = jnp.pad(position_ids, ((0, 0), (0, pad)))
    key_valid = jnp.pad(attention_mask, ((0, 0), (0, pad)))
    h = (params['wte'][tokens] + params['wpe'][position_ids]).astype(jnp.float32)
    causal = jnp.arange(Tp)[:, None] >= jnp.arange(Tp)[None, :]
    mask_add = jnp.where(causal[None] & key_valid[:, None, :], 0.0, NEG_INF)
    for li in range(N_LAYER):
        sm = params['small'][li]
        w_qkv = params['w_qkv'][li].astype(jnp.float32)
        w_proj = params['w_proj'][li].astype(jnp.float32)
        w_fc = params['w_fc'][li].astype(jnp.float32)
        w_mlp = params['w_mlp'][li].astype(jnp.float32)
        x = _layer_norm(h, sm[0], sm[1]).astype(jnp.bfloat16).astype(jnp.float32)
        qkv = x @ w_qkv
        q = qkv[..., :N_EMBD] + sm[4]
        k = qkv[..., N_EMBD:2 * N_EMBD] + sm[5]
        v = qkv[..., 2 * N_EMBD:] + sm[6]
        qh = q.reshape(B, Tp, N_HEAD, HEAD_DIM)
        kh = k.reshape(B, Tp, N_HEAD, HEAD_DIM)
        vh = v.reshape(B, Tp, N_HEAD, HEAD_DIM)
        s = jnp.einsum('bqhd,bkhd->bhqk', qh, kh) + mask_add[:, None]
        p = jax.nn.softmax(s, axis=-1)
        ctx = jnp.einsum('bhqk,bkhd->bqhd', p, vh).reshape(B, Tp, N_EMBD)
        h = h + (ctx.astype(jnp.bfloat16).astype(jnp.float32) @ w_proj) + sm[7]
        x2 = _layer_norm(h, sm[2], sm[3]).astype(jnp.bfloat16).astype(jnp.float32)
        ff = _gelu_new(x2 @ w_fc + params['b_fc'][li])
        h = h + (ff.astype(jnp.bfloat16).astype(jnp.float32) @ w_mlp) + sm[8]
    h = _layer_norm(h, params['lnf'][0], params['lnf'][1])
    hidden = h[:, :T]
    start = max(T - (L_in + 1 - int(add_start_token)), 0)
    output = hidden[:, start:]
    lengths = jnp.sum(input_ids != NULL_IDX, axis=-1)
    idx = L_in - lengths
    output = jax.vmap(lambda o, j: o.at[j].set(o[0]))(output, idx)
    return output


# --------------------------------- parameter init ---------------------------------
def init_params(key):
    ks = jax.random.split(key, 2 + N_LAYER)

    def nrm(k, shape, scale=0.02):
        return scale * jax.random.normal(k, shape, dtype=jnp.float32)

    att_scale = 1.0 / math.sqrt(HEAD_DIM)
    qkv_col_scale = jnp.concatenate([jnp.full((N_EMBD,), att_scale, jnp.float32),
                                     jnp.ones((2 * N_EMBD,), jnp.float32)])

    wqkv_l, wproj_l, wfc_l, bfc_l, wmlp_l, small_l = ([] for _ in range(6))
    for li in range(N_LAYER):
        lk = jax.random.split(ks[2 + li], 8)
        w_qkv = nrm(lk[0], (N_EMBD, 3 * N_EMBD))
        b_qkv = nrm(lk[1], (3 * N_EMBD,))
        w_proj = nrm(lk[2], (N_EMBD, N_EMBD))
        b_proj = nrm(lk[3], (N_EMBD,))
        w_fc = nrm(lk[4], (N_EMBD, FFN))
        b_fc = nrm(lk[5], (FFN,))
        w_mlp = nrm(lk[6], (FFN, N_EMBD))
        b_mlp = nrm(lk[7], (N_EMBD,))

        ln1_g = jnp.ones((N_EMBD,), jnp.float32)
        ln1_b = jnp.zeros((N_EMBD,), jnp.float32)
        ln2_g = jnp.ones((N_EMBD,), jnp.float32)
        ln2_b = jnp.zeros((N_EMBD,), jnp.float32)

        # fused (E, 3E) QKV slab, bf16, with 1/sqrt(head_dim) folded into the Q columns
        wqkv_l.append((w_qkv * qkv_col_scale[None, :]).astype(jnp.bfloat16))
        wproj_l.append(w_proj.astype(jnp.bfloat16))
        wfc_l.append(w_fc.astype(jnp.bfloat16))
        wmlp_l.append(w_mlp.astype(jnp.bfloat16))
        bfc_l.append(b_fc)
        # packed small-parameter slab: one DMA instead of ~9 per layer
        small_l.append(jnp.stack([ln1_g, ln1_b, ln2_g, ln2_b,
                                  b_qkv[:N_EMBD] * att_scale,
                                  b_qkv[N_EMBD:2 * N_EMBD],
                                  b_qkv[2 * N_EMBD:],
                                  b_proj, b_mlp], axis=0))                  # (9, E)

    return {
        'wte': nrm(ks[0], (VOCAB, N_EMBD)),
        'wpe': nrm(ks[1], (N_POS, N_EMBD), 0.01),
        'w_qkv': jnp.stack(wqkv_l),                                         # (L, E, 3E) bf16
        'w_proj': jnp.stack(wproj_l),                                       # (L, E, E)  bf16
        'w_fc': jnp.stack(wfc_l),                                           # (L, E, FFN) bf16
        'b_fc': jnp.stack(bfc_l)[:, None, :],                               # (L, 1, FFN) f32
        'w_mlp': jnp.stack(wmlp_l),                                         # (L, FFN, E) bf16
        'small': jnp.stack(small_l),                                        # (L, 9, E)  f32
        'lnf': jnp.stack([jnp.ones((N_EMBD,), jnp.float32),
                          jnp.zeros((N_EMBD,), jnp.float32)]),              # (2, E)
    }


if __name__ == "__main__":
    key = jax.random.PRNGKey(0)
    params = init_params(key)

    # batch=2, encoder (label-context) length 8, decoder input length 4,
    # second row has trailing NULL padding to exercise the lengths/rewrite path.
    encoder_state = jnp.array([[2, 3, 4, 5, 6, 7, 8, 9],
                               [10, 11, 12, 13, 14, 15, 16, 17]], dtype=jnp.int32)
    input_ids = jnp.array([[20, 21, 22, 23],
                           [24, 25, 0, 0]], dtype=jnp.int32)

    fwd = jax.jit(functools.partial(gpt2_decoder_forward, add_start_token=False))
    output, new_incr_state = fwd(params, input_ids, encoder_state)
    jax.block_until_ready(output)
    jax.block_until_ready(new_incr_state)

    assert output.shape == (2, input_ids.shape[1] + 1, N_EMBD)
    assert new_incr_state[0][0].shape == (2, N_HEAD,
                                          encoder_state.shape[1] + input_ids.shape[1],
                                          HEAD_DIM)
    assert bool(jnp.isfinite(output).all())

    # numerics: compare against a pure-JAX f32 reference using the same bf16 weights
    ref_fwd = jax.jit(functools.partial(gpt2_decoder_forward_ref, add_start_token=False))
    ref_out = ref_fwd(params, input_ids, encoder_state)
    max_err = float(jnp.max(jnp.abs(output - ref_out)))
    assert max_err < 3e-2, f"kernel vs reference max abs err {max_err}"

    print("KERNEL_OK")
</pallas_src>

<mosaic_0001>
module attributes {stable_mosaic.version = 11 : i64} {
  func.func @gpt2_layer_kernel(%arg0: i32, %arg1: i32, %arg2: memref<1x16x32xf32, #tpu.memory_space<vmem>>, %arg3: memref<1x1x16xf32, #tpu.memory_space<vmem>>, %arg4: memref<1x32x96xbf16, #tpu.memory_space<vmem>>, %arg5: memref<1x32x32xbf16, #tpu.memory_space<vmem>>, %arg6: memref<1x32x128xbf16, #tpu.memory_space<vmem>>, %arg7: memref<1x1x128xf32, #tpu.memory_space<vmem>>, %arg8: memref<1x128x32xbf16, #tpu.memory_space<vmem>>, %arg9: memref<1x9x32xf32, #tpu.memory_space<vmem>>, %arg10: memref<2x32xf32, #tpu.memory_space<vmem>>, %arg11: memref<1x16x32xf32, #tpu.memory_space<vmem>>, %arg12: memref<1x1x16x64xbf16, #tpu.memory_space<vmem>>, %arg13: memref<16x32xf32, #tpu.memory_space<vmem>>) attributes {dimension_semantics = [#tpu.dimension_semantics<parallel>, #tpu.dimension_semantics<arbitrary>], iteration_bounds = array<i64: 2, 2>, scalar_prefetch = 0 : i64, scratch_operands = 1 : i64, tpu.core_type = #tpu.core_type<tc>, window_params = [{transform_indices = @transform_0, window_bounds = array<i64: 1, 16, 32>}, {transform_indices = @transform_1, window_bounds = array<i64: 1, 1, 16>}, {transform_indices = @transform_2, window_bounds = array<i64: 1, 32, 96>}, {transform_indices = @transform_3, window_bounds = array<i64: 1, 32, 32>}, {transform_indices = @transform_4, window_bounds = array<i64: 1, 32, 128>}, {transform_indices = @transform_5, window_bounds = array<i64: 1, 1, 128>}, {transform_indices = @transform_6, window_bounds = array<i64: 1, 128, 32>}, {transform_indices = @transform_7, window_bounds = array<i64: 1, 9, 32>}, {pipeline_mode = #tpu.pipeline_mode<synchronous>, transform_indices = @transform_8, window_bounds = array<i64: 2, 32>}, {transform_indices = @transform_9, window_bounds = array<i64: 1, 16, 32>}, {transform_indices = @transform_10, window_bounds = array<i64: 1, 1, 16, 64>}]} {
    %c0_i32 = arith.constant 0 : i32
    %0 = arith.cmpi eq, %arg1, %c0_i32 : i32
    %1 = arith.extui %0 : i1 to i32
    %c0_i32_0 = arith.constant 0 : i32
    %2 = arith.cmpi ne, %1, %c0_i32_0 : i32
    scf.if %2 {
      %c0_64 = arith.constant 0 : index
      %c0_65 = arith.constant 0 : index
      %c0_66 = arith.constant 0 : index
      %194 = vector.load %arg2[%c0_64, %c0_65, %c0_66] : memref<1x16x32xf32, #tpu.memory_space<vmem>>, vector<1x16x32xf32>
      %195 = vector.shape_cast %194 : vector<1x16x32xf32> to vector<16x32xf32>
      %c0_67 = arith.constant 0 : index
      %c0_68 = arith.constant 0 : index
      %196 = vector.load %arg13[%c0_67, %c0_68] : memref<16x32xf32, #tpu.memory_space<vmem>>, vector<16x32xf32>
      tpu.vector_store %arg13[%c0_67, %c0_68], %195 {strides = array<i32>} : memref<16x32xf32, #tpu.memory_space<vmem>>, vector<16x32xf32>,
    } else {
    }
    %c0 = arith.constant 0 : index
    %c0_1 = arith.constant 0 : index
    %c0_2 = arith.constant 0 : index
    %3 = vector.load %arg9[%c0, %c0_1, %c0_2] : memref<1x9x32xf32, #tpu.memory_space<vmem>>, vector<1x9x32xf32>
    %4 = vector.shape_cast %3 : vector<1x9x32xf32> to vector<9x32xf32>
    %5 = vector.extract_strided_slice %4 {offsets = [0, 0], sizes = [1, 32], strides = [1, 1]} : vector<9x32xf32> to vector<1x32xf32>
    %6 = vector.extract_strided_slice %4 {offsets = [1, 0], sizes = [1, 32], strides = [1, 1]} : vector<9x32xf32> to vector<1x32xf32>
    %7 = vector.extract_strided_slice %4 {offsets = [2, 0], sizes = [1, 32], strides = [1, 1]} : vector<9x32xf32> to vector<1x32xf32>
    %8 = vector.extract_strided_slice %4 {offsets = [3, 0], sizes = [1, 32], strides = [1, 1]} : vector<9x32xf32> to vector<1x32xf32>
    %9 = vector.extract_strided_slice %4 {offsets = [4, 0], sizes = [1, 32], strides = [1, 1]} : vector<9x32xf32> to vector<1x32xf32>
    %10 = vector.extract_strided_slice %4 {offsets = [5, 0], sizes = [1, 32], strides = [1, 1]} : vector<9x32xf32> to vector<1x32xf32>
    %11 = vector.extract_strided_slice %4 {offsets = [6, 0], sizes = [1, 32], strides = [1, 1]} : vector<9x32xf32> to vector<1x32xf32>
    %12 = vector.extract_strided_slice %4 {offsets = [7, 0], sizes = [1, 32], strides = [1, 1]} : vector<9x32xf32> to vector<1x32xf32>
    %13 = vector.extract_strided_slice %4 {offsets = [8, 0], sizes = [1, 32], strides = [1, 1]} : vector<9x32xf32> to vector<1x32xf32>
    %c0_3 = arith.constant 0 : index
    %c0_4 = arith.constant 0 : index
    %14 = vector.load %arg13[%c0_3, %c0_4] : memref<16x32xf32, #tpu.memory_space<vmem>>, vector<16x32xf32>
    %cst = arith.constant dense<0.000000e+00> : vector<16xf32>
    %15 = vector.multi_reduction <add>, %14, %cst [1] : vector<16x32xf32> to vector<16xf32>
    %16 = vector.shape_cast %15 : vector<16xf32> to vector<16x1xf32>
    %cst_5 = arith.constant 3.200000e+01 : f32
    %17 = vector.broadcast %cst_5 : f32 to vector<16x1xf32>
    %18 = arith.divf %16, %17 : vector<16x1xf32>
    %19 = vector.broadcast %18 : vector<16x1xf32> to vector<16x32xf32>
    %20 = arith.subf %14, %19 : vector<16x32xf32>
    %21 = vector.broadcast %18 : vector<16x1xf32> to vector<16x32xf32>
    %22 = arith.subf %14, %21 : vector<16x32xf32>
    %23 = arith.mulf %20, %22 : vector<16x32xf32>
    %cst_6 = arith.constant dense<0.000000e+00> : vector<16xf32>
    %24 = vector.multi_reduction <add>, %23, %cst_6 [1] : vector<16x32xf32> to vector<16xf32>
    %25 = vector.shape_cast %24 : vector<16xf32> to vector<16x1xf32>
    %cst_7 = arith.constant 3.200000e+01 : f32
    %26 = vector.broadcast %cst_7 : f32 to vector<16x1xf32>
    %27 = arith.divf %25, %26 : vector<16x1xf32>
    %28 = vector.broadcast %18 : vector<16x1xf32> to vector<16x32xf32>
    %29 = arith.subf %14, %28 : vector<16x32xf32>
    %cst_8 = arith.constant 9.99999974E-6 : f32
    %30 = vector.broadcast %cst_8 : f32 to vector<16x1xf32>
    %31 = arith.addf %27, %30 : vector<16x1xf32>
    %32 = math.rsqrt %31 : vector<16x1xf32>
    %33 = vector.broadcast %32 : vector<16x1xf32> to vector<16x32xf32>
    %34 = arith.mulf %29, %33 : vector<16x32xf32>
    %35 = vector.broadcast %5 : vector<1x32xf32> to vector<16x32xf32>
    %36 = arith.mulf %34, %35 : vector<16x32xf32>
    %37 = vector.broadcast %6 : vector<1x32xf32> to vector<16x32xf32>
    %38 = arith.addf %36, %37 : vector<16x32xf32>
    %39 = arith.truncf %38 : vector<16x32xf32> to vector<16x32xbf16>
    %c0_9 = arith.constant 0 : index
    %c0_10 = arith.constant 0 : index
    %c0_11 = arith.constant 0 : index
    %40 = vector.load %arg4[%c0_9, %c0_10, %c0_11] : memref<1x32x96xbf16, #tpu.memory_space<vmem>>, vector<1x32x96xbf16>
    %41 = vector.shape_cast %40 : vector<1x32x96xbf16> to vector<32x96xbf16>
    %cst_12 = arith.constant dense<0.000000e+00> : vector<16x96xf32>
    %42 = tpu.matmul %39, %41, %cst_12 {dimension_numbers = #tpu.dot_dimension_numbers<[1], [0], [0], [1], [0, 0, 1, 1], [], []>} : vector<16x32xbf16>, vector<32x96xbf16>, vector<16x96xf32> -> vector<16x96xf32>
    %43 = vector.extract_strided_slice %42 {offsets = [0, 0], sizes = [16, 32], strides = [1, 1]} : vector<16x96xf32> to vector<16x32xf32>
    %44 = vector.broadcast %9 : vector<1x32xf32> to vector<16x32xf32>
    %45 = arith.addf %43, %44 : vector<16x32xf32>
    %46 = vector.extract_strided_slice %42 {offsets = [0, 32], sizes = [16, 32], strides = [1, 1]} : vector<16x96xf32> to vector<16x32xf32>
    %47 = vector.broadcast %10 : vector<1x32xf32> to vector<16x32xf32>
    %48 = arith.addf %46, %47 : vector<16x32xf32>
    %49 = vector.extract_strided_slice %42 {offsets = [0, 64], sizes = [16, 32], strides = [1, 1]} : vector<16x96xf32> to vector<16x32xf32>
    %50 = vector.broadcast %11 : vector<1x32xf32> to vector<16x32xf32>
    %51 = arith.addf %49, %50 : vector<16x32xf32>
    %52 = tpu.concatenate %48, %51 in 1 : vector<16x32xf32>, vector<16x32xf32> -> vector<16x64xf32>
    %53 = arith.truncf %52 : vector<16x64xf32> to vector<16x64xbf16>
    %c0_13 = arith.constant 0 : index
    %c0_14 = arith.constant 0 : index
    %c0_15 = arith.constant 0 : index
    %c0_16 = arith.constant 0 : index
    %54 = vector.load %arg12[%c0_13, %c0_14, %c0_15, %c0_16] : memref<1x1x16x64xbf16, #tpu.memory_space<vmem>>, vector<1x1x16x64xbf16>
    %55 = vector.shape_cast %54 : vector<1x1x16x64xbf16> to vector<16x64xbf16>
    %56 = vector.shape_cast %53 : vector<16x64xbf16> to vector<1x1x16x64xbf16>
    tpu.vector_store %arg12[%c0_13, %c0_14, %c0_15, %c0_16], %56 {strides = array<i32>} : memref<1x1x16x64xbf16, #tpu.memory_space<vmem>>, vector<1x1x16x64xbf16>,
    %57 = tpu.iota {dimensions = array<i32: 0>} : vector<16x16xi32>
    %58 = tpu.iota {dimensions = array<i32: 1>} : vector<16x16xi32>
    %59 = arith.cmpi sge, %57, %58 : vector<16x16xi32>
    %c0_17 = arith.constant 0 : index
    %c0_18 = arith.constant 0 : index
    %c0_19 = arith.constant 0 : index
    %60 = vector.load %arg3[%c0_17, %c0_18, %c0_19] : memref<1x1x16xf32, #tpu.memory_space<vmem>>, vector<1x1x16xf32>
    %61 = vector.shape_cast %60 : vector<1x1x16xf32> to vector<1x16xf32>
    %cst_20 = arith.constant -1.000000e+09 : f32
    %62 = vector.shape_cast %61 : vector<1x16xf32> to vector<1x16xf32>
    %63 = vector.broadcast %62 : vector<1x16xf32> to vector<16x16xf32>
    %64 = vector.broadcast %cst_20 : f32 to vector<16x16xf32>
    %65 = arith.select %59, %63, %64 : vector<16x16xi1>, vector<16x16xf32>
    %66 = vector.extract_strided_slice %45 {offsets = [0, 0], sizes = [16, 8], strides = [1, 1]} : vector<16x32xf32> to vector<16x8xf32>
    %67 = vector.extract_strided_slice %48 {offsets = [0, 0], sizes = [16, 8], strides = [1, 1]} : vector<16x32xf32> to vector<16x8xf32>
    %cst_21 = arith.constant dense<0.000000e+00> : vector<16x16xf32>
    %68 = tpu.matmul %66, %67, %cst_21 {dimension_numbers = #tpu.dot_dimension_numbers<[1], [1], [0], [0], [0, 0, 1, 0], [], []>} : vector<16x8xf32>, vector<16x8xf32>, vector<16x16xf32> -> vector<16x16xf32>
    %69 = arith.addf %68, %65 : vector<16x16xf32>
    %cst_22 = arith.constant dense<0xFF800000> : vector<16xf32>
    %70 = vector.multi_reduction <maximumf>, %69, %cst_22 [1] : vector<16x16xf32> to vector<16xf32>
    %71 = vector.shape_cast %70 : vector<16xf32> to vector<16x1xf32>
    %72 = vector.broadcast %71 : vector<16x1xf32> to vector<16x16xf32>
    %73 = arith.subf %69, %72 : vector<16x16xf32>
    %74 = math.exp %73 : vector<16x16xf32>
    %cst_23 = arith.constant dense<0.000000e+00> : vector<16xf32>
    %75 = vector.multi_reduction <add>, %74, %cst_23 [1] : vector<16x16xf32> to vector<16xf32>
    %76 = vector.shape_cast %75 : vector<16xf32> to vector<16x1xf32>
    %77 = tpu.reciprocal %76 {approx = true} : vector<16x1xf32> -> vector<16x1xf32>
    %78 = vector.broadcast %77 : vector<16x1xf32> to vector<16x16xf32>
    %79 = arith.mulf %74, %78 : vector<16x16xf32>
    %80 = vector.extract_strided_slice %51 {offsets = [0, 0], sizes = [16, 8], strides = [1, 1]} : vector<16x32xf32> to vector<16x8xf32>
    %cst_24 = arith.constant dense<0.000000e+00> : vector<16x8xf32>
    %81 = tpu.matmul %79, %80, %cst_24 {dimension_numbers = #tpu.dot_dimension_numbers<[1], [0], [0], [1], [0, 0, 1, 1], [], []>} : vector<16x16xf32>, vector<16x8xf32>, vector<16x8xf32> -> vector<16x8xf32>
    %82 = vector.extract_strided_slice %45 {offsets = [0, 8], sizes = [16, 8], strides = [1, 1]} : vector<16x32xf32> to vector<16x8xf32>
    %83 = vector.extract_strided_slice %48 {offsets = [0, 8], sizes = [16, 8], strides = [1, 1]} : vector<16x32xf32> to vector<16x8xf32>
    %cst_25 = arith.constant dense<0.000000e+00> : vector<16x16xf32>
    %84 = tpu.matmul %82, %83, %cst_25 {dimension_numbers = #tpu.dot_dimension_numbers<[1], [1], [0], [0], [0, 0, 1, 0], [], []>} : vector<16x8xf32>, vector<16x8xf32>, vector<16x16xf32> -> vector<16x16xf32>
    %85 = arith.addf %84, %65 : vector<16x16xf32>
    %cst_26 = arith.constant dense<0xFF800000> : vector<16xf32>
    %86 = vector.multi_reduction <maximumf>, %85, %cst_26 [1] : vector<16x16xf32> to vector<16xf32>
    %87 = vector.shape_cast %86 : vector<16xf32> to vector<16x1xf32>
    %88 = vector.broadcast %87 : vector<16x1xf32> to vector<16x16xf32>
    %89 = arith.subf %85, %88 : vector<16x16xf32>
    %90 = math.exp %89 : vector<16x16xf32>
    %cst_27 = arith.constant dense<0.000000e+00> : vector<16xf32>
    %91 = vector.multi_reduction <add>, %90, %cst_27 [1] : vector<16x16xf32> to vector<16xf32>
    %92 = vector.shape_cast %91 : vector<16xf32> to vector<16x1xf32>
    %93 = tpu.reciprocal %92 {approx = true} : vector<16x1xf32> -> vector<16x1xf32>
    %94 = vector.broadcast %93 : vector<16x1xf32> to vector<16x16xf32>
    %95 = arith.mulf %90, %94 : vector<16x16xf32>
    %96 = vector.extract_strided_slice %51 {offsets = [0, 8], sizes = [16, 8], strides = [1, 1]} : vector<16x32xf32> to vector<16x8xf32>
    %cst_28 = arith.constant dense<0.000000e+00> : vector<16x8xf32>
    %97 = tpu.matmul %95, %96, %cst_28 {dimension_numbers = #tpu.dot_dimension_numbers<[1], [0], [0], [1], [0, 0, 1, 1], [], []>} : vector<16x16xf32>, vector<16x8xf32>, vector<16x8xf32> -> vector<16x8xf32>
    %98 = vector.extract_strided_slice %45 {offsets = [0, 16], sizes = [16, 8], strides = [1, 1]} : vector<16x32xf32> to vector<16x8xf32>
    %99 = vector.extract_strided_slice %48 {offsets = [0, 16], sizes = [16, 8], strides = [1, 1]} : vector<16x32xf32> to vector<16x8xf32>
    %cst_29 = arith.constant dense<0.000000e+00> : vector<16x16xf32>
    %100 = tpu.matmul %98, %99, %cst_29 {dimension_numbers = #tpu.dot_dimension_numbers<[1], [1], [0], [0], [0, 0, 1, 0], [], []>} : vector<16x8xf32>, vector<16x8xf32>, vector<16x16xf32> -> vector<16x16xf32>
    %101 = arith.addf %100, %65 : vector<16x16xf32>
    %cst_30 = arith.constant dense<0xFF800000> : vector<16xf32>
    %102 = vector.multi_reduction <maximumf>, %101, %cst_30 [1] : vector<16x16xf32> to vector<16xf32>
    %103 = vector.shape_cast %102 : vector<16xf32> to vector<16x1xf32>
    %104 = vector.broadcast %103 : vector<16x1xf32> to vector<16x16xf32>
    %105 = arith.subf %101, %104 : vector<16x16xf32>
    %106 = math.exp %105 : vector<16x16xf32>
    %cst_31 = arith.constant dense<0.000000e+00> : vector<16xf32>
    %107 = vector.multi_reduction <add>, %106, %cst_31 [1] : vector<16x16xf32> to vector<16xf32>
    %108 = vector.shape_cast %107 : vector<16xf32> to vector<16x1xf32>
    %109 = tpu.reciprocal %108 {approx = true} : vector<16x1xf32> -> vector<16x1xf32>
    %110 = vector.broadcast %109 : vector<16x1xf32> to vector<16x16xf32>
    %111 = arith.mulf %106, %110 : vector<16x16xf32>
    %112 = vector.extract_strided_slice %51 {offsets = [0, 16], sizes = [16, 8], strides = [1, 1]} : vector<16x32xf32> to vector<16x8xf32>
    %cst_32 = arith.constant dense<0.000000e+00> : vector<16x8xf32>
    %113 = tpu.matmul %111, %112, %cst_32 {dimension_numbers = #tpu.dot_dimension_numbers<[1], [0], [0], [1], [0, 0, 1, 1], [], []>} : vector<16x16xf32>, vector<16x8xf32>, vector<16x8xf32> -> vector<16x8xf32>
    %114 = vector.extract_strided_slice %45 {offsets = [0, 24], sizes = [16, 8], strides = [1, 1]} : vector<16x32xf32> to vector<16x8xf32>
    %115 = vector.extract_strided_slice %48 {offsets = [0, 24], sizes = [16, 8], strides = [1, 1]} : vector<16x32xf32> to vector<16x8xf32>
    %cst_33 = arith.constant dense<0.000000e+00> : vector<16x16xf32>
    %116 = tpu.matmul %114, %115, %cst_33 {dimension_numbers = #tpu.dot_dimension_numbers<[1], [1], [0], [0], [0, 0, 1, 0], [], []>} : vector<16x8xf32>, vector<16x8xf32>, vector<16x16xf32> -> vector<16x16xf32>
    %117 = arith.addf %116, %65 : vector<16x16xf32>
    %cst_34 = arith.constant dense<0xFF800000> : vector<16xf32>
    %118 = vector.multi_reduction <maximumf>, %117, %cst_34 [1] : vector<16x16xf32> to vector<16xf32>
    %119 = vector.shape_cast %118 : vector<16xf32> to vector<16x1xf32>
    %120 = vector.broadcast %119 : vector<16x1xf32> to vector<16x16xf32>
    %121 = arith.subf %117, %120 : vector<16x16xf32>
    %122 = math.exp %121 : vector<16x16xf32>
    %cst_35 = arith.constant dense<0.000000e+00> : vector<16xf32>
    %123 = vector.multi_reduction <add>, %122, %cst_35 [1] : vector<16x16xf32> to vector<16xf32>
    %124 = vector.shape_cast %123 : vector<16xf32> to vector<16x1xf32>
    %125 = tpu.reciprocal %124 {approx = true} : vector<16x1xf32> -> vector<16x1xf32>
    %126 = vector.broadcast %125 : vector<16x1xf32> to vector<16x16xf32>
    %127 = arith.mulf %122, %126 : vector<16x16xf32>
    %128 = vector.extract_strided_slice %51 {offsets = [0, 24], sizes = [16, 8], strides = [1, 1]} : vector<16x32xf32> to vector<16x8xf32>
    %cst_36 = arith.constant dense<0.000000e+00> : vector<16x8xf32>
    %129 = tpu.matmul %127, %128, %cst_36 {dimension_numbers = #tpu.dot_dimension_numbers<[1], [0], [0], [1], [0, 0, 1, 1], [], []>} : vector<16x16xf32>, vector<16x8xf32>, vector<16x8xf32> -> vector<16x8xf32>
    %130 = tpu.concatenate %81, %97, %113, %129 in 1 : vector<16x8xf32>, vector<16x8xf32>, vector<16x8xf32>, vector<16x8xf32> -> vector<16x32xf32>
    %131 = arith.truncf %130 : vector<16x32xf32> to vector<16x32xbf16>
    %c0_37 = arith.constant 0 : index
    %c0_38 = arith.constant 0 : index
    %c0_39 = arith.constant 0 : index
    %132 = vector.load %arg5[%c0_37, %c0_38, %c0_39] : memref<1x32x32xbf16, #tpu.memory_space<vmem>>, vector<1x32x32xbf16>
    %133 = vector.shape_cast %132 : vector<1x32x32xbf16> to vector<32x32xbf16>
    %cst_40 = arith.constant dense<0.000000e+00> : vector<16x32xf32>
    %134 = tpu.matmul %131, %133, %cst_40 {dimension_numbers = #tpu.dot_dimension_numbers<[1], [0], [0], [1], [0, 0, 1, 1], [], []>} : vector<16x32xbf16>, vector<32x32xbf16>, vector<16x32xf32> -> vector<16x32xf32>
    %135 = arith.addf %14, %134 : vector<16x32xf32>
    %136 = vector.broadcast %12 : vector<1x32xf32> to vector<16x32xf32>
    %137 = arith.addf %135, %136 : vector<16x32xf32>
    %cst_41 = arith.constant dense<0.000000e+00> : vector<16xf32>
    %138 = vector.multi_reduction <add>, %137, %cst_41 [1] : vector<16x32xf32> to vector<16xf32>
    %139 = vector.shape_cast %138 : vector<16xf32> to vector<16x1xf32>
    %cst_42 = arith.constant 3.200000e+01 : f32
    %140 = vector.broadcast %cst_42 : f32 to vector<16x1xf32>
    %141 = arith.divf %139, %140 : vector<16x1xf32>
    %142 = vector.broadcast %141 : vector<16x1xf32> to vector<16x32xf32>
    %143 = arith.subf %137, %142 : vector<16x32xf32>
    %144 = vector.broadcast %141 : vector<16x1xf32> to vector<16x32xf32>
    %145 = arith.subf %137, %144 : vector<16x32xf32>
    %146 = arith.mulf %143, %145 : vector<16x32xf32>
    %cst_43 = arith.constant dense<0.000000e+00> : vector<16xf32>
    %147 = vector.multi_reduction <add>, %146, %cst_43 [1] : vector<16x32xf32> to vector<16xf32>
    %148 = vector.shape_cast %147 : vector<16xf32> to vector<16x1xf32>
    %cst_44 = arith.constant 3.200000e+01 : f32
    %149 = vector.broadcast %cst_44 : f32 to vector<16x1xf32>
    %150 = arith.divf %148, %149 : vector<16x1xf32>
    %151 = vector.broadcast %141 : vector<16x1xf32> to vector<16x32xf32>
    %152 = arith.subf %137, %151 : vector<16x32xf32>
    %cst_45 = arith.constant 9.99999974E-6 : f32
    %153 = vector.broadcast %cst_45 : f32 to vector<16x1xf32>
    %154 = arith.addf %150, %153 : vector<16x1xf32>
    %155 = math.rsqrt %154 : vector<16x1xf32>
    %156 = vector.broadcast %155 : vector<16x1xf32> to vector<16x32xf32>
    %157 = arith.mulf %152, %156 : vector<16x32xf32>
    %158 = vector.broadcast %7 : vector<1x32xf32> to vector<16x32xf32>
    %159 = arith.mulf %157, %158 : vector<16x32xf32>
    %160 = vector.broadcast %8 : vector<1x32xf32> to vector<16x32xf32>
    %161 = arith.addf %159, %160 : vector<16x32xf32>
    %162 = arith.truncf %161 : vector<16x32xf32> to vector<16x32xbf16>
    %c0_46 = arith.constant 0 : index
    %c0_47 = arith.constant 0 : index
    %c0_48 = arith.constant 0 : index
    %163 = vector.load %arg6[%c0_46, %c0_47, %c0_48] : memref<1x32x128xbf16, #tpu.memory_space<vmem>>, vector<1x32x128xbf16>
    %164 = vector.shape_cast %163 : vector<1x32x128xbf16> to vector<32x128xbf16>
    %cst_49 = arith.constant dense<0.000000e+00> : vector<16x128xf32>
    %165 = tpu.matmul %162, %164, %cst_49 {dimension_numbers = #tpu.dot_dimension_numbers<[1], [0], [0], [1], [0, 0, 1, 1], [], []>} : vector<16x32xbf16>, vector<32x128xbf16>, vector<16x128xf32> -> vector<16x128xf32>
    %c0_50 = arith.constant 0 : index
    %c0_51 = arith.constant 0 : index
    %c0_52 = arith.constant 0 : index
    %166 = vector.load %arg7[%c0_50, %c0_51, %c0_52] : memref<1x1x128xf32, #tpu.memory_space<vmem>>, vector<1x1x128xf32>
    %167 = vector.shape_cast %166 : vector<1x1x128xf32> to vector<1x128xf32>
    %168 = vector.broadcast %167 : vector<1x128xf32> to vector<16x128xf32>
    %169 = arith.addf %165, %168 : vector<16x128xf32>
    %cst_53 = arith.constant 5.000000e-01 : f32
    %170 = vector.broadcast %cst_53 : f32 to vector<16x128xf32>
    %171 = arith.mulf %170, %169 : vector<16x128xf32>
    %cst_54 = arith.constant 4.471500e-02 : f32
    %172 = vector.broadcast %cst_54 : f32 to vector<16x128xf32>
    %173 = arith.mulf %172, %169 : vector<16x128xf32>
    %174 = arith.mulf %173, %169 : vector<16x128xf32>
    %175 = arith.mulf %174, %169 : vector<16x128xf32>
    %176 = arith.addf %169, %175 : vector<16x128xf32>
    %cst_55 = arith.constant 0.797884583 : f32
    %177 = vector.broadcast %cst_55 : f32 to vector<16x128xf32>
    %178 = arith.mulf %177, %176 : vector<16x128xf32>
    %179 = math.tanh %178 : vector<16x128xf32>
    %cst_56 = arith.constant 1.000000e+00 : f32
    %180 = vector.broadcast %cst_56 : f32 to vector<16x128xf32>
    %181 = arith.addf %180, %179 : vector<16x128xf32>
    %182 = arith.mulf %171, %181 : vector<16x128xf32>
    %183 = arith.truncf %182 : vector<16x128xf32> to vector<16x128xbf16>
    %c0_57 = arith.constant 0 : index
    %c0_58 = arith.constant 0 : index
    %c0_59 = arith.constant 0 : index
    %184 = vector.load %arg8[%c0_57, %c0_58, %c0_59] : memref<1x128x32xbf16, #tpu.memory_space<vmem>>, vector<1x128x32xbf16>
    %185 = vector.shape_cast %184 : vector<1x128x32xbf16> to vector<128x32xbf16>
    %cst_60 = arith.constant dense<0.000000e+00> : vector<16x32xf32>
    %186 = tpu.matmul %183, %185, %cst_60 {dimension_numbers = #tpu.dot_dimension_numbers<[1], [0], [0], [1], [0, 0, 1, 1], [], []>} : vector<16x128xbf16>, vector<128x32xbf16>, vector<16x32xf32> -> vector<16x32xf32>
    %187 = arith.addf %137, %186 : vector<16x32xf32>
    %188 = vector.broadcast %13 : vector<1x32xf32> to vector<16x32xf32>
    %189 = arith.addf %187, %188 : vector<16x32xf32>
    %c0_61 = arith.constant 0 : index
    %c0_62 = arith.constant 0 : index
    %190 = vector.load %arg13[%c0_61, %c0_62] : memref<16x32xf32, #tpu.memory_space<vmem>>, vector<16x32xf32>
    tpu.vector_store %arg13[%c0_61, %c0_62], %189 {strides = array<i32>} : memref<16x32xf32, #tpu.memory_space<vmem>>, vector<16x32xf32>,
    %c1_i32 = arith.constant 1 : i32
    %191 = arith.cmpi eq, %arg1, %c1_i32 : i32
    %192 = arith.extui %191 : i1 to i32
    %c0_i32_63 = arith.constant 0 : i32
    %193 = arith.cmpi ne, %192, %c0_i32_63 : i32
    scf.if %193 {
      %c0_64 = arith.constant 0 : index
      %c0_65 = arith.constant 0 : index
      %194 = vector.load %arg10[%c0_64, %c0_65] : memref<2x32xf32, #tpu.memory_space<vmem>>, vector<1x32xf32>
      %c1 = arith.constant 1 : index
      %c0_66 = arith.constant 0 : index
      %195 = vector.load %arg10[%c1, %c0_66] : memref<2x32xf32, #tpu.memory_space<vmem>>, vector<1x32xf32>
      %cst_67 = arith.constant dense<0.000000e+00> : vector<16xf32>
      %196 = vector.multi_reduction <add>, %189, %cst_67 [1] : vector<16x32xf32> to vector<16xf32>
      %197 = vector.shape_cast %196 : vector<16xf32> to vector<16x1xf32>
      %cst_68 = arith.constant 3.200000e+01 : f32
      %198 = vector.broadcast %cst_68 : f32 to vector<16x1xf32>
      %199 = arith.divf %197, %198 : vector<16x1xf32>
      %200 = vector.broadcast %199 : vector<16x1xf32> to vector<16x32xf32>
      %201 = arith.subf %189, %200 : vector<16x32xf32>
      %202 = vector.broadcast %199 : vector<16x1xf32> to vector<16x32xf32>
      %203 = arith.subf %189, %202 : vector<16x32xf32>
      %204 = arith.mulf %201, %203 : vector<16x32xf32>
      %cst_69 = arith.constant dense<0.000000e+00> : vector<16xf32>
      %205 = vector.multi_reduction <add>, %204, %cst_69 [1] : vector<16x32xf32> to vector<16xf32>
      %206 = vector.shape_cast %205 : vector<16xf32> to vector<16x1xf32>
      %cst_70 = arith.constant 3.200000e+01 : f32
      %207 = vector.broadcast %cst_70 : f32 to vector<16x1xf32>
      %208 = arith.divf %206, %207 : vector<16x1xf32>
      %209 = vector.broadcast %199 : vector<16x1xf32> to vector<16x32xf32>
      %210 = arith.subf %189, %209 : vector<16x32xf32>
      %cst_71 = arith.constant 9.99999974E-6 : f32
      %211 = vector.broadcast %cst_71 : f32 to vector<16x1xf32>
      %212 = arith.addf %208, %211 : vector<16x1xf32>
      %213 = math.rsqrt %212 : vector<16x1xf32>
      %214 = vector.broadcast %213 : vector<16x1xf32> to vector<16x32xf32>
      %215 = arith.mulf %210, %214 : vector<16x32xf32>
      %216 = vector.broadcast %194 : vector<1x32xf32> to vector<16x32xf32>
      %217 = arith.mulf %215, %216 : vector<16x32xf32>
      %218 = vector.broadcast %195 : vector<1x32xf32> to vector<16x32xf32>
      %219 = arith.addf %217, %218 : vector<16x32xf32>
      %c0_72 = arith.constant 0 : index
      %c0_73 = arith.constant 0 : index
      %c0_74 = arith.constant 0 : index
      %220 = vector.load %arg11[%c0_72, %c0_73, %c0_74] : memref<1x16x32xf32, #tpu.memory_space<vmem>>, vector<1x16x32xf32>
      %221 = vector.shape_cast %220 : vector<1x16x32xf32> to vector<16x32xf32>
      %222 = vector.shape_cast %219 : vector<16x32xf32> to vector<1x16x32xf32>
      tpu.vector_store %arg11[%c0_72, %c0_73, %c0_74], %222 {strides = array<i32>} : memref<1x16x32xf32, #tpu.memory_space<vmem>>, vector<1x16x32xf32>,
    } else {
    }
    return
  }
  func.func @transform_0(%arg0: i32, %arg1: i32) -> (i32, i32, i32) {
    %c0_i32 = arith.constant 0 : i32
    %c0_i32_0 = arith.constant 0 : i32
    %c0_i32_1 = arith.constant 0 : i32
    return %arg0, %c0_i32, %c0_i32_0 : i32, i32, i32
  }
  func.func @transform_1(%arg0: i32, %arg1: i32) -> (i32, i32, i32) {
    %c0_i32 = arith.constant 0 : i32
    %c0_i32_0 = arith.constant 0 : i32
    %c0_i32_1 = arith.constant 0 : i32
    return %arg0, %c0_i32, %c0_i32_0 : i32, i32, i32
  }
  func.func @transform_2(%arg0: i32, %arg1: i32) -> (i32, i32, i32) {
    %c0_i32 = arith.constant 0 : i32
    %c0_i32_0 = arith.constant 0 : i32
    %c0_i32_1 = arith.constant 0 : i32
    return %arg1, %c0_i32, %c0_i32_0 : i32, i32, i32
  }
  func.func @transform_3(%arg0: i32, %arg1: i32) -> (i32, i32, i32) {
    %c0_i32 = arith.constant 0 : i32
    %c0_i32_0 = arith.constant 0 : i32
    %c0_i32_1 = arith.constant 0 : i32
    return %arg1, %c0_i32, %c0_i32_0 : i32, i32, i32
  }
  func.func @transform_4(%arg0: i32, %arg1: i32) -> (i32, i32, i32) {
    %c0_i32 = arith.constant 0 : i32
    %c0_i32_0 = arith.constant 0 : i32
    %c0_i32_1 = arith.constant 0 : i32
    return %arg1, %c0_i32, %c0_i32_0 : i32, i32, i32
  }
  func.func @transform_5(%arg0: i32, %arg1: i32) -> (i32, i32, i32) {
    %c0_i32 = arith.constant 0 : i32
    %c0_i32_0 = arith.constant 0 : i32
    %c0_i32_1 = arith.constant 0 : i32
    return %arg1, %c0_i32, %c0_i32_0 : i32, i32, i32
  }
  func.func @transform_6(%arg0: i32, %arg1: i32) -> (i32, i32, i32) {
    %c0_i32 = arith.constant 0 : i32
    %c0_i32_0 = arith.constant 0 : i32
    %c0_i32_1 = arith.constant 0 : i32
    return %arg1, %c0_i32, %c0_i32_0 : i32, i32, i32
  }
  func.func @transform_7(%arg0: i32, %arg1: i32) -> (i32, i32, i32) {
    %c0_i32 = arith.constant 0 : i32
    %c0_i32_0 = arith.constant 0 : i32
    %c0_i32_1 = arith.constant 0 : i32
    return %arg1, %c0_i32, %c0_i32_0 : i32, i32, i32
  }
  func.func @transform_8(%arg0: i32, %arg1: i32) -> (i32, i32) {
    %c0_i32 = arith.constant 0 : i32
    %c0_i32_0 = arith.constant 0 : i32
    %c0_i32_1 = arith.constant 0 : i32
    return %c0_i32, %c0_i32_0 : i32, i32
  }
  func.func @transform_9(%arg0: i32, %arg1: i32) -> (i32, i32, i32) {
    %c0_i32 = arith.constant 0 : i32
    %c0_i32_0 = arith.constant 0 : i32
    %c0_i32_1 = arith.constant 0 : i32
    return %arg0, %c0_i32, %c0_i32_0 : i32, i32, i32
  }
  func.func @transform_10(%arg0: i32, %arg1: i32) -> (i32, i32, i32, i32) {
    %c0_i32 = arith.constant 0 : i32
    %c0_i32_0 = arith.constant 0 : i32
    %c0_i32_1 = arith.constant 0 : i32
    return %arg1, %arg0, %c0_i32, %c0_i32_0 : i32, i32, i32, i32
  }
}

</mosaic_0001>

<bundles_post_ra>
// kernel: gpt2_decoder_forward.1
= control target key start
LH: loop header
LB: loop body
LE: loop exit
PB: predicated region body
PF: predicated region fallthrough
CT: control target
= control target key end

     0   :  { %s2572_s13 = smov 0   ;;  %s2574_s14 = smov 0   ;;  %s2920_s0 = inlined_call_operand.vmem [shape: f32[2,16,32], index: 0, kind: input, shape index: {}]   ;;  %s2921_s1 = inlined_call_operand.vmem [shape: f32[2,1,16], index: 1, kind: input, shape index: {}]   ;;  %s2922_s2 = inlined_call_operand.vmem [shape: bf16[2,32,96], index: 2, kind: input, shape index: {}]   ;;  %s2923_s3 = inlined_call_operand.vmem [shape: bf16[2,32,32], index: 3, kind: input, shape index: {}]   ;;  %s2924_s4 = inlined_call_operand.vmem [shape: bf16[2,32,128], index: 4, kind: input, shape index: {}]   ;;  %s2925_s5 = inlined_call_operand.vmem [shape: f32[2,1,128], index: 5, kind: input, shape index: {}]   ;;  %s2926_s6 = inlined_call_operand.vmem [shape: bf16[2,128,32], index: 6, kind: input, shape index: {}]   ;;  %s2927_s7 = inlined_call_operand.vmem [shape: f32[2,9,32], index: 7, kind: input, shape index: {}]   ;;  %s2928_s8 = inlined_call_operand.vmem [shape: f32[2,32], index: 8, kind: input, shape index: {}]   ;;  %s2929_s9 = inlined_call_operand.vmem [shape: f32[2,16,32], index: 9, kind: output, shape index: {0}]   ;;  %s2930_s10 = inlined_call_operand.vmem [shape: bf16[2,2,16,64], index: 10, kind: output, shape index: {1}]  }
   0x1   :  { %2935 = sst [smem:[#allocation8_spill]] %s2920_s0  ;;  %s2576_s15 = smov 0  }
   0x2   :  { %2936 = sst [smem:[#allocation9_spill]] %s2922_s2  ;;  %s2578_s16 = smov 0  }
   0x3   :  { %2937 = sst [smem:[#allocation10_spill]] %s2923_s3  ;;  %s2580_s17 = smov 0  }
   0x4   :  { %2938 = sst [smem:[#allocation11_spill]] %s2924_s4 }
   0x5   :  { %2939 = sst [smem:[#allocation12_spill]] %s2928_s8 }
   0x6 LB: > { %2940 = sst [smem:[#allocation3_spill]] %s2490_s15  ;;  %s30_s18 = sadd.s32 1, %s2490_s15  ;;  %s2498_s17 = sphi %s2580_s17, %s21_s17   ;;  %s2494_s16 = sphi %s2578_s16, %s2956_s16   ;;  %s2490_s15 = sphi %s2576_s15, %s2955_s15   ;;  %s2486_s14 = sphi %s2574_s14, %s2954_s14   ;;  %s2482_s13 = sphi %s2572_s13, %s2953_s13  }
   0x7   : > { %2941 = sst [smem:[#allocation4_spill]] %s2494_s16  ;;  %s33_s19 = sadd.s32 1, %s2494_s16 }
   0x8   : > { %2942 = sst [smem:[#allocation5_spill]] %s2498_s17  ;;  %p31_p0 = scmp.ge.s32.totalorder %s30_s18, 2 }
   0x9   : > { %p2092_p1 = scmp.ge.s32.totalorder %s2498_s17, 1  ;;  %p395_p2 = scmp.lt.s32.totalorder %s2498_s17, 5 }
   0xa   : > { %s2958_s18 = smov (%p31_p0, %s30_s18), 0  ;;  %s2960_s19 = smov (!%p31_p0, %s33_s19), %s2494_s16 }
   0xb   : > { %2943 = sst [smem:[#allocation6_spill]] %s2958_s18  ;;  %p396_p3 = pnand %p2092_p1, %p395_p2 }
   0xc   : > { %p35_p4 = scmp.ge.s32.totalorder %s2960_s19, 2  ;;  %p473_p5 = scmp.lt.s32.totalorder (!%p396_p3), %s2486_s14, 1 }
   0xd   : > { %399 = sbr.rel (%p396_p3) target bundleno = 3844 (0xf04), region = 56  ;;  %p481_p6 = scmp.lt.s32.totalorder (!%p396_p3), %s2482_s13, 1 }
   0xe   : > { %s2962_s19 = smov (%p35_p4, %s2960_s19), 0  ;;  %s2945_s0 = sld [smem:[#allocation8_spill]] (!%p396_p3) }
   0xf   : > { %2944 = sst [smem:[#allocation7_spill]] %s2962_s19  ;;  %p2110_p7 = scmp.ne.s32.totalorder (!%p396_p3), %s2482_s13, 0 }
  0x10   : > { %s2946_s2 = sld [smem:[#allocation9_spill]] (!%p396_p3) }
  0x11   : > { %s2947_s3 = sld [smem:[#allocation10_spill]] (!%p396_p3) }
  0x12   : > { %s2964_s14 = smov (!%p473_p5, %s2486_s14), 1  ;;  %s2948_s4 = sld [smem:[#allocation11_spill]] }
  0x13   : > { %s2608_s20 = scalar_select %p481_p6, %s2482_s13, 1 }
  0x14   : > { %s2162_s21 = sshll.u32 %s2964_s14, 4  ;;  %s2107_s16 = sshll.u32 %s2964_s14, 1 }
  0x15   : > { %s477_s27 = scalar_lea.vmem %s2945_s0, %s2162_s21  ;;  %s2163_s28 = sshll.u32 %s2608_s20, 4 }
  0x16   : > { %s2622_s11 = scalar_lea.vmem %s2946_s2, %s2163_s28  ;;  %s2166_s26 = sshll.u32 %s2608_s20, 6 }
  0x17   : > { %s2627_s18 = scalar_lea.vmem %s2947_s3, %s2163_s28  ;;  %s2642_s29 = scalar_lea.vmem %s2927_s7, %s2163_s28 }
  0x18   : > { %s2632_s22 = scalar_lea.vmem %s2948_s4, %s2163_s28  ;;  %s2647_s19 = scalar_lea.vmem %s2926_s6, %s2166_s26 }
  0x19   : > { %s2652_s15 = scalar_lea.vmem %s2929_s9, %s2162_s21  ;;  %s2108_s4 = sshll.u32 %s2608_s20, 2 }
  0x1a   : > { %s520_s24 = sadd.s32 %s2108_s4, %s2107_s16  ;;  %527 = sbr.rel (%p2110_p7) target bundleno = 33 (0x21), region = 60 }
  0x1b   : > { %s2109_s23 = sshll.u32 %s520_s24, 2 }
  0x1c   : > { %s2659_s0 = scalar_lea.vmem %s2930_s10, %s2109_s23 }
  0x1f   : > { %v528_v0 = vld [vmem:[%s477_s27] sm:$0xff]  ;;  %vm530_vm0 = vcmask 261120   ;;  %v529_v1 = vld [vmem:[%s477_s27 + $0x8] sm:$0xff] }
  0x20   : > { %531 = vst.msk [vmem:[#allocation2] sm:$0xff] %vm530_vm0, %v528_v0  ;;  %532 = vst.msk [vmem:[#allocation2 + $0x8] sm:$0xff] %vm530_vm0, %v529_v1 }
  0x21 PF: > { %vm537_vm1 = vcmask 261120   ;;  %v2398_v16 = vld [vmem:[%s2622_s11 + $0x8] sm:$0xff]   ;;  %v2500_v17 = vmov 0.0   ;;  %vm2501_vm2 = vmmov 0   ;;  %v2399_v18 = vld [vmem:[%s2622_s11] sm:$0xff]   ;;  %v565_v19 = vlaneseq  ;;  %s2502_s2 = smov 32   ;;  %s2949_s17 = scalar_lea.vmem %s2921_s1, %s2964_s14 }
  0x22   : > { %2221 = vmatprep.subr.bf16.mxu1 %v2500_v17  ;;  %2225 = vmatprep.mubr.msk.bf16.mxu1 %vm2501_vm2, %v2500_v17  ;;  %v2684_v22 = vld [vmem:[%s2642_s29] sm:$0xff]  ;;  %vm709_vm3 = vcmask 64512   ;;  %s2503_s3 = smov 96   ;;  %vm795_vm6 = vcmask 130048   ;;  %s2504_s14 = smov 64   ;;  %vm1533_vm7 = vcmask 195584  }
  0x23   : > { %2222 = vmatpush3.bf16.msra.mxu1 %v2398_v16  ;;  %v2680_v20 = vshrl.u32 %v565_v19, 7  ;;  %v697_v57 = vand.u32 127, %v565_v19  ;;  %v2116_v58 = vld [vmem:[%s2949_s17] ss:$0 sm:$0xff]  ;;  %s2505_s21 = smov 88   ;;  %s2506_s27 = smov 80  }
  0x24   : > { %2223 = vmatprep.subr.bf16.mxu1 %v2500_v17  ;;  %s2507_s28 = smov 120   ;;  %s2508_s11 = smov 112   ;;  %vm690_vm8 = vcmask 519168  }
  0x25   : > { %v646_v21 = vsub.s32 5, %v2680_v20  ;;  %v567_v30 = vsub.s32 0, %v2680_v20  ;;  %v573_v34 = vsub.s32 1, %v2680_v20  ;;  %v640_v43 = vsub.s32 4, %v2680_v20  ;;  %s2509_s25 = smov 56   ;;  %s2510_s26 = smov 48  }
  0x26   : > { %v695_v56 = vadd.s32 8, %v2680_v20  ;;  %vm698_vm5 = vcmp.ge.s32.totalorder %v2680_v20, %v697_v57  ;;  %s2511_s30 = smov 72   ;;  %s2512_s12 = smov 104  }
  0x27   : > { %v2662_v2 = vld [vmem:[#allocation2] sm:$0xff]  ;;  %v2664_v3 = vld [vmem:[#allocation2 + $0x8] sm:$0xff]  ;;  %2224 = vmatpush3.bf16.msra.mxu1 %v2399_v18  ;;  %v647_v23 = vrot.slane %v2684_v22, %v646_v21  ;;  %v568_v33 = vrot.slane %v2684_v22, %v567_v30  ;;  %v574_v38 = vrot.slane %v2684_v22, %v573_v34  ;;  %v641_v44 = vrot.slane %v2684_v22, %v640_v43  ;;  %s2513_s16 = smov 40   ;;  %s2514_s24 = smov 8  }
  0x28   : > { %v538_v4 = vsel %vm537_vm1, %v2662_v2, 0.0  ;;  %v541_v5 = vsel %vm537_vm1, %v2664_v3, 0.0  ;;  %vm699_vm4 = vcmp.ge.s32.totalorder %v695_v56, %v697_v57  ;;  %v2731_v61 = vsel %vm698_vm5, %v2116_v58, -1e+09  ;;  %s2515_s23 = smov 16   ;;  %p2157_p8 = scmp.ne.s32.totalorder %s2482_s13, 1 }
  0x29   : > { %539 = vadd.xlane.f32.xlu0 %v538_v4  ;;  %v2729_v59 = vsel %vm699_vm4, %v2116_v58, -1e+09 }
  0x2d   : > { %542 = vadd.xlane.f32.xlu0 %v541_v5  ;;  %v656_v5 = vsub.s32 6, %v2680_v20 }
  0x43   : > { %649 = vrot.lane.b32.xlu0 %v647_v23, %s2502_s2  ;;  %s2516_s2 = smov 24  }
  0xb2   : > { %v540_v6 = vpop.xlane.xlu0 %539 }
  0xb3   : > { %v545_v7 = vmul.f32 0.03125, %v540_v6  ;;  %v657_v6 = vrot.slane %v2684_v22, %v656_v5 }
  0xb5   : > { %v547_v8 = vsub.f32 %v2662_v2, %v545_v7 }
  0xb6   : > { %v543_v9 = vpop.xlane.xlu0 %542 }
  0xb7   : > { %v546_v10 = vmul.f32 0.03125, %v543_v9  ;;  %v549_v11 = vmul.f32 %v547_v8, %v547_v8 }
  0xb9   : > { %v548_v12 = vsub.f32 %v2664_v3, %v546_v10  ;;  %v551_v13 = vsel %vm537_vm1, %v549_v11, 0.0 }
  0xba   : > { %552 = vadd.xlane.f32.xlu1 %v551_v13  ;;  %v650_v48 = vpop.permute.xlu0 %649 }
  0xbb   : > { %v550_v14 = vmul.f32 %v548_v12, %v548_v12 }
  0xbd   : > { %v554_v15 = vsel %vm537_vm1, %v550_v14, 0.0 }
  0xbe   : > { %555 = vadd.xlane.f32.xlu1 %v554_v15 }
 0x143   : > { %v553_v24 = vpop.xlane.xlu1 %552 }
 0x144   : > { %v557_v25 = vmul.f32 0.03125, %v553_v24 }
 0x146   : > { %v559_v26 = vadd.f32 1e-05, %v557_v25 }
 0x147   : > { %v556_v27 = vpop.xlane.xlu1 %555 }
 0x148   : > { %2412 = vrsqrt.f32 %v559_v26  ;;  %v558_v28 = vmul.f32 0.03125, %v556_v27 }
 0x14a   : > { %v560_v29 = vadd.f32 1e-05, %v558_v28 }
 0x14c   : > { %2414 = vrsqrt.f32 %v560_v29 }
 0x155   : > { %v2413_v31 = vpop.eup %2412 }
 0x156   : > { %v563_v32 = vmul.f32 %v2413_v31, %v547_v8 }
 0x158   : > { %v569_v37 = vmul.f32 %v568_v33, %v563_v32 }
 0x159   : > { %v2415_v35 = vpop.eup %2414 }
 0x15a   : > { %v564_v36 = vmul.f32 %v2415_v35, %v548_v12  ;;  %v575_v40 = vadd.f32 %v574_v38, %v569_v37 }
 0x15c   : > { %v570_v39 = vmul.f32 %v568_v33, %v564_v36 }
 0x15e   : > { %v576_v41 = vadd.f32 %v574_v38, %v570_v39 }
 0x160   : > { %v577_v42 = vpack.c.bf16 %v576_v41, %v575_v40 }
 0x162   : > { %2226 = vmatmul.mubr.msk.bf16.vlgmr.msra.gmra.mxu1 %vm537_vm1, %v577_v42 }
 0x222   : > { %v631_v45 = vpop.f32.mrf.mxu1 }
 0x223   : > { %v2694_v46 = vadd.f32 %v641_v44, %v631_v45  ;;  %v2702_v52 = vadd.f32 %v650_v48, %v631_v45 }
 0x224   : > { %v2227_v47 = vpop.f32.mrf.mxu1 }
 0x225   : > { %2233 = vmatprep.mubr.msk.f32.mxu1 %vm709_vm3, %v2694_v46 }
 0x226   : > { %v634_v49 = vpop.f32.mrf.mxu1 }
 0x227   : > { %v2698_v50 = vadd.f32 %v650_v48, %v634_v49  ;;  %v2718_v55 = vadd.f32 %v641_v44, %v634_v49 }
 0x228   : > { %v2228_v51 = vpop.f32.mrf.mxu1 }
 0x229   : > { %668 = vrot.lane.b32.xlu1 %v2698_v50, %s2503_s3 }
 0x22d   : > { %666 = vrot.lane.b32.xlu1 %v2702_v52, %s2503_s3 }
 0x29b   : > { %v2706_v53 = vpop.permute.xlu1 %668 }
 0x29c   : > { %2229 = vmatprep.subr.msk.mxu1 %vm709_vm3, %v2706_v53 }
 0x29d   : > { %2230 = vmatpush3.xpose.msk.msra.mxu1 %vm709_vm3, %v2706_v53 }
 0x29f   : > { %v2712_v54 = vpop.permute.xlu1 %666 }
 0x2a0   : > { %2231 = vmatprep.subr.msk.mxu1 %vm709_vm3, %v2712_v54 }
 0x2a1   : > { %2232 = vmatpush3.xpose.msk.msra.mxu1 %vm709_vm3, %v2712_v54 }
 0x2a4   : > { %2234 = vmatmul.mubr.msk.f32.vlgmr.msra.gmra.mxu1 %vm709_vm3, %v2718_v55 }
 0x364   : > { %v2235_v60 = vpop.f32.mrf.mxu1 }
 0x365   : > { %v792_v62 = vadd.f32 %v2235_v60, %v2729_v59 }
 0x366   : > { %v786_v63 = vpop.f32.mrf.mxu1 }
 0x367   : > { %v787_v0 = vadd.f32 %v786_v63, %v2731_v61  ;;  %v799_v1 = vsel %vm795_vm6, %v792_v62, -inf }
 0x368   : > { %800 = vmax.xlane.f32.xlu0 %v799_v1 }
 0x369   : > { %v796_v4 = vsel %vm795_vm6, %v787_v0, -inf }
 0x36a   : > { %797 = vmax.xlane.f32.xlu1 %v796_v4 }
 0x37e   : > { %659 = vrot.lane.b32.xlu0 %v657_v6, %s2504_s14 }
 0x3f1   : > { %v801_v7 = vpop.xlane.xlu0 %800 }
 0x3f2   : > { %v803_v11 = vsub.f32 %v792_v62, %v801_v7 }
 0x3f3   : > { %v798_v12 = vpop.xlane.xlu1 %797 }
 0x3f4   : > { %v806_v13 = vmul.f32 1.442695, %v803_v11  ;;  %v802_v14 = vsub.f32 %v787_v0, %v798_v12 }
 0x3f5   : > { %v660_v8 = vpop.permute.xlu0 %659 }
 0x3f6   : > { %v2739_v9 = vadd.f32 %v660_v8, %v631_v45  ;;  %v2741_v10 = vadd.f32 %v660_v8, %v634_v49  ;;  %2416 = vpow2.f32 %v806_v13  ;;  %v804_v15 = vmul.f32 1.442695, %v802_v14 }
 0x3f8   : > { %818 = vrot.lane.b32.xlu0 %v2739_v9, %s2504_s14  ;;  %820 = vrot.lane.b32.xlu1 %v2741_v10, %s2504_s14  ;;  %2418 = vpow2.f32 %v804_v15 }
 0x3fc   : > { %911 = vrot.lane.b32.xlu0 %v2698_v50, %s2505_s21  ;;  %909 = vrot.lane.b32.xlu1 %v2702_v52, %s2505_s21 }
 0x400   : > { %1111 = vrot.lane.b32.xlu0 %v2698_v50, %s2506_s27  ;;  %905 = vrot.lane.b32.xlu1 %v2694_v46, %s2507_s28 }
 0x403   : > { %v2417_v16 = vpop.eup %2416 }
 0x404   : > { %907 = vrot.lane.b32.xlu0 %v2718_v55, %s2507_s28  ;;  %v811_v18 = vsel %vm795_vm6, %v2417_v16, 0.0 }
 0x405   : > { %v2419_v19 = vpop.eup %2418 }
 0x406   : > { %v808_v21 = vsel %vm795_vm6, %v2419_v19, 0.0 }
 0x408   : > { %1105 = vrot.lane.b32.xlu0 %v2694_v46, %s2508_s11 }
 0x424   : > { %812 = vadd.xlane.f32.xlu1 %v811_v18 }
 0x428   : > { %809 = vadd.xlane.f32.xlu1 %v808_v21 }
 0x439   : > { %1109 = vrot.lane.b32.xlu1 %v2702_v52, %s2506_s27 }
 0x43d   : > { %1107 = vrot.lane.b32.xlu1 %v2718_v55, %s2508_s11 }
 0x46a   : > { %v819_v23 = vpop.permute.xlu0 %818  ;;  %v821_v24 = vpop.permute.xlu1 %820 }
 0x46b   : > { %2236 = vmatprep.subr.mxu1 %v821_v24 }
 0x46c   : > { %2237 = vmatpush3.msra.mxu1 %v821_v24 }
 0x46d   : > { %2238 = vmatprep.subr.mxu1 %v819_v23 }
 0x46e   : > { %v912_v25 = vpop.permute.xlu0 %911  ;;  %2239 = vmatpush3.msra.mxu1 %v819_v23  ;;  %v910_v29 = vpop.permute.xlu1 %909 }
 0x46f   : > { %2243 = vmatprep.subr.msk.mxu1 %vm709_vm3, %v912_v25 }
 0x472   : > { %v1112_v26 = vpop.permute.xlu0 %1111  ;;  %v906_v30 = vpop.permute.xlu1 %905 }
 0x473   : > { %2257 = vmatprep.subr.msk.mxu0 %vm709_vm3, %v1112_v26 }
 0x474   : > { %2258 = vmatpush3.xpose.msk.msra.mxu0 %vm709_vm3, %v1112_v26 }
 0x476   : > { %v908_v27 = vpop.permute.xlu0 %907 }
 0x47a   : > { %v1106_v28 = vpop.permute.xlu0 %1105 }
 0x47b   : > { %2261 = vmatprep.mubr.msk.f32.mxu0 %vm709_vm3, %v1106_v28 }
 0x4ad   : > { %v813_v31 = vpop.xlane.xlu1 %812 }
 0x4ae   : > { %2420 = vrcp.f32 %v813_v31 }
 0x4b1   : > { %v810_v32 = vpop.xlane.xlu1 %809 }
 0x4b2   : > { %2422 = vrcp.f32 %v810_v32 }
 0x4b5   : > { %v1110_v33 = vpop.permute.xlu1 %1109 }
 0x4b6   : > { %2259 = vmatprep.subr.msk.mxu0 %vm709_vm3, %v1110_v33 }
 0x4b7   : > { %2260 = vmatpush3.xpose.msk.msra.mxu0 %vm709_vm3, %v1110_v33 }
 0x4b9   : > { %v1108_v34 = vpop.permute.xlu1 %1107 }
 0x4ba   : > { %2262 = vmatmul.mubr.msk.f32.vlgmr.msra.gmra.mxu0 %vm709_vm3, %v1108_v34 }
 0x4bb   : > { %v2421_v35 = vpop.eup %2420 }
 0x4bc   : > { %v817_v38 = vmul.f32 %v2421_v35, %v2417_v16 }
 0x4bf   : > { %v2423_v36 = vpop.eup %2422 }
 0x4c0   : > { %v816_v37 = vmul.f32 %v2423_v36, %v2419_v19 }
 0x4c2   : > { %2240 = vmatprep.mubr.msk.f32.mxu1 %vm795_vm6, %v816_v37 }
 0x4c3   : > { %2241 = vmatmul.mubr.msk.f32.vlgmr.msra.gmra.mxu1 %vm795_vm6, %v817_v38 }
 0x4c4   : > { %2244 = vmatpush3.xpose.msk.msra.mxu1 %vm709_vm3, %v912_v25  ;;  %2247 = vmatprep.mubr.msk.f32.mxu1 %vm709_vm3, %v906_v30 }
 0x4c5   : > { %2245 = vmatprep.subr.msk.mxu1 %vm709_vm3, %v910_v29 }
 0x4c8   : > { %2246 = vmatpush3.xpose.msk.msra.mxu1 %vm709_vm3, %v910_v29 }
 0x4cb   : > { %2248 = vmatmul.mubr.msk.f32.vlgmr.msra.gmra.mxu1 %vm709_vm3, %v908_v27 }
 0x57a   : > { %v2263_v40 = vpop.f32.mrf.mxu0 }
 0x57b   : > { %v1193_v56 = vadd.f32 %v2263_v40, %v2729_v59 }
 0x57c   : > { %v1187_v44 = vpop.f32.mrf.mxu0 }
 0x57d   : > { %v1188_v49 = vadd.f32 %v1187_v44, %v2731_v61  ;;  %v1199_v58 = vsel %vm795_vm6, %v1193_v56, -inf }
 0x57f   : > { %v1196_v57 = vsel %vm795_vm6, %v1188_v49, -inf }
 0x583   : > { %v2769_v39 = vpop.f32.mrf.mxu1 }
 0x585   : > { %v2771_v41 = vpop.f32.mrf.mxu1 }
 0x58b   : > { %v2249_v42 = vpop.f32.mrf.mxu1 }
 0x58c   : > { %v993_v43 = vadd.f32 %v2249_v42, %v2729_v59 }
 0x58d   : > { %v987_v45 = vpop.f32.mrf.mxu1 }
 0x58e   : > { %v988_v47 = vadd.f32 %v987_v45, %v2731_v61  ;;  %v999_v48 = vsel %vm795_vm6, %v993_v43, -inf }
 0x58f   : > { %1000 = vmax.xlane.f32.xlu1 %v999_v48 }
 0x590   : > { %v996_v51 = vsel %vm795_vm6, %v988_v47, -inf }
 0x591   : > { %997 = vmax.xlane.f32.xlu0 %v996_v51 }
 0x595   : > { %1197 = vmax.xlane.f32.xlu0 %v1196_v57 }
 0x599   : > { %1200 = vmax.xlane.f32.xlu0 %v1199_v58 }
 0x618   : > { %v1001_v63 = vpop.xlane.xlu1 %1000 }
 0x619   : > { %v1003_v4 = vsub.f32 %v993_v43, %v1001_v63 }
 0x61a   : > { %v998_v60 = vpop.xlane.xlu0 %997 }
 0x61b   : > { %v1002_v62 = vsub.f32 %v988_v47, %v998_v60  ;;  %v1006_v11 = vmul.f32 1.442695, %v1003_v4 }
 0x61d   : > { %v1004_v5 = vmul.f32 1.442695, %v1002_v62 }
 0x61e   : > { %v1198_v0 = vpop.xlane.xlu0 %1197 }
 0x61f   : > { %v1202_v1 = vsub.f32 %v1188_v49, %v1198_v0 }
 0x621   : > { %v1204_v6 = vmul.f32 1.442695, %v1202_v1 }
 0x622   : > { %v1201_v7 = vpop.xlane.xlu0 %1200 }
 0x623   : > { %2424 = vpow2.f32 %v1204_v6  ;;  %v1203_v8 = vsub.f32 %v1193_v56, %v1201_v7 }
 0x624   : > { %2426 = vpow2.f32 %v1004_v5 }
 0x625   : > { %v1206_v12 = vmul.f32 1.442695, %v1203_v8 }
 0x627   : > { %2428 = vpow2.f32 %v1206_v12 }
 0x628   : > { %2430 = vpow2.f32 %v1006_v11 }
 0x630   : > { %v2425_v13 = vpop.eup %2424 }
 0x631   : > { %v1208_v14 = vsel %vm795_vm6, %v2425_v13, 0.0  ;;  %v2427_v15 = vpop.eup %2426 }
 0x632   : > { %1209 = vadd.xlane.f32.xlu0 %v1208_v14  ;;  %v1008_v18 = vsel %vm795_vm6, %v2427_v15, 0.0 }
 0x634   : > { %v2429_v16 = vpop.eup %2428 }
 0x635   : > { %v1211_v19 = vsel %vm795_vm6, %v2429_v16, 0.0  ;;  %v2431_v21 = vpop.eup %2430 }
 0x636   : > { %1009 = vadd.xlane.f32.xlu0 %v1008_v18  ;;  %1212 = vadd.xlane.f32.xlu1 %v1211_v19  ;;  %v1011_v23 = vsel %vm795_vm6, %v2431_v21, 0.0  ;;  %v2400_v19 = vld [vmem:[%s2627_s18 + $0x8] sm:$0xff]  }
 0x63a   : > { %1012 = vadd.xlane.f32.xlu1 %v1011_v23 }
 0x64b   : > { %1018 = vrot.lane.b32.xlu1 %v2739_v9, %s2509_s25 }
 0x64c   : > { %1020 = vrot.lane.b32.xlu0 %v2741_v10, %s2509_s25 }
 0x64f   : > { %1220 = vrot.lane.b32.xlu1 %v2741_v10, %s2510_s26 }
 0x650   : > { %1311 = vrot.lane.b32.xlu0 %v2698_v50, %s2511_s30 }
 0x653   : > { %1218 = vrot.lane.b32.xlu1 %v2739_v9, %s2510_s26 }
 0x654   : > { %1305 = vrot.lane.b32.xlu0 %v2694_v46, %s2512_s12 }
 0x657   : > { %1309 = vrot.lane.b32.xlu1 %v2702_v52, %s2511_s30 }
 0x65b   : > { %1307 = vrot.lane.b32.xlu1 %v2718_v55, %s2512_s12 }
 0x6bb   : > { %v1210_v24 = vpop.xlane.xlu0 %1209 }
 0x6bf   : > { %v1010_v25 = vpop.xlane.xlu0 %1009  ;;  %v1213_v26 = vpop.xlane.xlu1 %1212 }
 0x6c0   : > { %2432 = vrcp.f32 %v1010_v25 }
 0x6c1   : > { %2434 = vrcp.f32 %v1210_v24 }
 0x6c3   : > { %v1021_v27 = vpop.permute.xlu0 %1020  ;;  %v1013_v28 = vpop.xlane.xlu1 %1012 }
 0x6c4   : > { %2436 = vrcp.f32 %v1013_v28  ;;  %2250 = vmatprep.subr.mxu1 %v1021_v27 }
 0x6c5   : > { %2251 = vmatpush3.msra.mxu1 %v1021_v27  ;;  %2438 = vrcp.f32 %v1213_v26 }
 0x6c7   : > { %v1019_v50 = vpop.permute.xlu1 %1018  ;;  %v1312_v31 = vpop.permute.xlu0 %1311 }
 0x6c8   : > { %2252 = vmatprep.subr.mxu1 %v1019_v50 }
 0x6c9   : > { %2253 = vmatpush3.msra.mxu1 %v1019_v50 }
 0x6cb   : > { %v1221_v29 = vpop.permute.xlu1 %1220  ;;  %v1306_v37 = vpop.permute.xlu0 %1305 }
 0x6cc   : > { %2264 = vmatprep.subr.mxu1 %v1221_v29 }
 0x6cd   : > { %v2433_v46 = vpop.eup %2432 }
 0x6ce   : > { %v1016_v52 = vmul.f32 %v2433_v46, %v2427_v15  ;;  %v2435_v30 = vpop.eup %2434 }
 0x6cf   : > { %v1219_v34 = vpop.permute.xlu1 %1218  ;;  %v1216_v35 = vmul.f32 %v2435_v30, %v2425_v13 }
 0x6d0   : > { %2254 = vmatprep.mubr.msk.f32.mxu1 %vm795_vm6, %v1016_v52 }
 0x6d1   : > { %v2437_v55 = vpop.eup %2436 }
 0x6d2   : > { %v1017_v32 = vmul.f32 %v2437_v55, %v2431_v21  ;;  %v2439_v33 = vpop.eup %2438  ;;  %v2401_v21 = vld [vmem:[%s2627_s18] sm:$0xff]  }
 0x6d3   : > { %v1217_v36 = vmul.f32 %v2439_v33, %v2429_v16  ;;  %v1310_v38 = vpop.permute.xlu1 %1309 }
 0x6d4   : > { %2255 = vmatmul.mubr.msk.f32.vlgmr.msra.gmra.mxu1 %vm795_vm6, %v1017_v32 }
 0x6d5   : > { %2265 = vmatpush3.msra.mxu1 %v1221_v29  ;;  %2268 = vmatprep.mubr.msk.f32.mxu1 %vm795_vm6, %v1216_v35 }
 0x6d6   : > { %2266 = vmatprep.subr.mxu1 %v1219_v34 }
 0x6d7   : > { %2267 = vmatpush3.msra.mxu1 %v1219_v34  ;;  %v1308_v40 = vpop.permute.xlu1 %1307 }
 0x6d8   : > { %2271 = vmatprep.subr.msk.mxu1 %vm709_vm3, %v1312_v31  ;;  %2269 = vmatmul.mubr.msk.f32.vlgmr.msra.gmra.mxu1 %vm795_vm6, %v1217_v36 }
 0x6d9   : > { %2272 = vmatpush3.xpose.msk.msra.mxu1 %vm709_vm3, %v1312_v31  ;;  %2275 = vmatprep.mubr.msk.f32.mxu1 %vm709_vm3, %v1306_v37 }
 0x6da   : > { %2273 = vmatprep.subr.msk.mxu1 %vm709_vm3, %v1310_v38 }
 0x6dd   : > { %2274 = vmatpush3.xpose.msk.msra.mxu1 %vm709_vm3, %v1310_v38  ;;  %v1601_v38 = vsub.s32 7, %v2680_v20 }
 0x6de   : > { %2293 = vmatprep.subr.bf16.mxu1 %v2500_v17 }
 0x6e0   : > { %2276 = vmatmul.mubr.msk.f32.vlgmr.msra.gmra.mxu1 %vm709_vm3, %v1308_v40 }
 0x6e1   : > { %2297 = vmatprep.mubr.msk.bf16.mxu1 %vm2501_vm2, %v2500_v17 }
 0x794   : > { %v2256_v42 = vpop.f32.mrf.mxu1 }
 0x796   : > { %v1096_v43 = vpop.f32.mrf.mxu1 }
 0x797   : > { %v2378_v58 = vpack.i.bf16 %v2256_v42, %v1096_v43 }
 0x798   : > { %v2270_v44 = vpop.f32.mrf.mxu1 }
 0x79a   : > { %v1296_v45 = vpop.f32.mrf.mxu1 }
 0x79b   : > { %v2383_v60 = vpack.i.bf16 %v2270_v44, %v1296_v45 }
 0x7a0   : > { %v2277_v47 = vpop.f32.mrf.mxu1 }
 0x7a1   : > { %v1393_v48 = vadd.f32 %v2277_v47, %v2729_v59 }
 0x7a2   : > { %v1387_v49 = vpop.f32.mrf.mxu1 }
 0x7a3   : > { %v1388_v51 = vadd.f32 %v1387_v49, %v2731_v61  ;;  %v1399_v56 = vsel %vm795_vm6, %v1393_v48, -inf }
 0x7a4   : > { %1400 = vmax.xlane.f32.xlu1 %v1399_v56 }
 0x7a5   : > { %v1396_v57 = vsel %vm795_vm6, %v1388_v51, -inf }
 0x7a6   : > { %1397 = vmax.xlane.f32.xlu0 %v1396_v57 }
 0x7b5   : > { %1418 = vrot.lane.b32.xlu1 %v2739_v9, %s2513_s16 }
 0x7b9   : > { %2379 = vrot.lane.b32.xlu1 %v2378_v58, %s2514_s24 }
 0x7bd   : > { %2384 = vrot.lane.b32.xlu1 %v2383_v60, %s2515_s23 }
 0x82d   : > { %v1401_v62 = vpop.xlane.xlu1 %1400 }
 0x82e   : > { %v1403_v59 = vsub.f32 %v1393_v48, %v1401_v62 }
 0x82f   : > { %v1398_v63 = vpop.xlane.xlu0 %1397 }
 0x830   : > { %v1406_v0 = vmul.f32 1.442695, %v1403_v59  ;;  %v1402_v61 = vsub.f32 %v1388_v51, %v1398_v63 }
 0x831   : > { %v1419_v13 = vpop.permute.xlu1 %1418 }
 0x832   : > { %2440 = vpow2.f32 %v1406_v0  ;;  %v1404_v1 = vmul.f32 1.442695, %v1402_v61 }
 0x834   : > { %2442 = vpow2.f32 %v1404_v1 }
 0x835   : > { %v2380_v26 = vpop.permute.xlu1 %2379 }
 0x836   : > { %v2382_v28 = vunpack.i.h.bf16 %v2380_v26  ;;  %v2381_v50 = vunpack.i.l.bf16 %v2380_v26 }
 0x838   : > { %v1530_v30 = vsel %vm709_vm3, %v2769_v39, %v2382_v28  ;;  %v1529_v55 = vsel %vm709_vm3, %v2771_v41, %v2381_v50  ;;  %v1602_v39 = vrot.slane %v2684_v22, %v1601_v38 }
 0x839   : > { %v2385_v27 = vpop.permute.xlu1 %2384 }
 0x83a   : > { %v2387_v29 = vunpack.i.h.bf16 %v2385_v27  ;;  %v2386_v46 = vunpack.i.l.bf16 %v2385_v27 }
 0x83c   : > { %v1531_v33 = vsel %vm795_vm6, %v1529_v55, %v2386_v46  ;;  %v1532_v34 = vsel %vm795_vm6, %v1530_v30, %v2387_v29  ;;  %v2406_v30 = vld [vmem:[%s2647_s19 + $0x28] sm:$0xff]   ;;  %v2408_v55 = vld [vmem:[%s2647_s19 + $0x18] sm:$0xff]  }
 0x83f   : > { %v2441_v4 = vpop.eup %2440 }
 0x840   : > { %v1411_v5 = vsel %vm795_vm6, %v2441_v4, 0.0 }
 0x841   : > { %v2443_v6 = vpop.eup %2442  ;;  %1412 = vadd.xlane.f32.xlu0 %v1411_v5 }
 0x842   : > { %v1408_v7 = vsel %vm795_vm6, %v2443_v6, 0.0 }
 0x845   : > { %1409 = vadd.xlane.f32.xlu0 %v1408_v7 }
 0x85b   : > { %1420 = vrot.lane.b32.xlu0 %v2741_v10, %s2513_s16 }
 0x8ca   : > { %v1413_v8 = vpop.xlane.xlu0 %1412 }
 0x8cb   : > { %2444 = vrcp.f32 %v1413_v8  ;;  %v2402_v8 = vld [vmem:[%s2632_s22 + $0x8] sm:$0xff]  }
 0x8cc   : > { %2294 = vmatpush3.bf16.msra.mxu1 %v2402_v8 }
 0x8cd   : > { %2295 = vmatprep.subr.bf16.mxu1 %v2500_v17 }
 0x8ce   : > { %v1410_v11 = vpop.xlane.xlu0 %1409 }
 0x8cf   : > { %2446 = vrcp.f32 %v1410_v11  ;;  %v2403_v11 = vld [vmem:[%s2632_s22] sm:$0xff]  }
 0x8d0   : > { %2296 = vmatpush3.bf16.msra.mxu1 %v2403_v11 }
 0x8d2   : > { %v1421_v12 = vpop.permute.xlu0 %1420 }
 0x8d3   : > { %2278 = vmatprep.subr.mxu0 %v1421_v12 }
 0x8d4   : > { %2279 = vmatpush3.msra.mxu0 %v1421_v12 }
 0x8d5   : > { %2280 = vmatprep.subr.mxu0 %v1419_v13 }
 0x8d6   : > { %2281 = vmatpush3.msra.mxu0 %v1419_v13 }
 0x8d7   : > { %2285 = vmatprep.subr.bf16.mxu0 %v2500_v17 }
 0x8d8   : > { %v2445_v14 = vpop.eup %2444 }
 0x8d9   : > { %v1417_v18 = vmul.f32 %v2445_v14, %v2441_v4 }
 0x8dc   : > { %v2447_v15 = vpop.eup %2446 }
 0x8dd   : > { %v1416_v16 = vmul.f32 %v2447_v15, %v2443_v6 }
 0x8df   : > { %2282 = vmatprep.mubr.msk.f32.mxu0 %vm795_vm6, %v1416_v16  ;;  %v1633_v16 = vsub.s32 2, %v2680_v20 }
 0x8e0   : > { %2283 = vmatmul.mubr.msk.f32.vlgmr.msra.gmra.mxu0 %vm795_vm6, %v1417_v18 }
 0x8e1   : > { %2289 = vmatprep.mubr.msk.bf16.mxu0 %vm2501_vm2, %v2500_v17  ;;  %2286 = vmatpush3.bf16.msra.mxu0 %v2400_v19 }
 0x8e2   : > { %2287 = vmatprep.subr.bf16.mxu0 %v2500_v17 }
 0x8e5   : > { %2288 = vmatpush3.bf16.msra.mxu0 %v2401_v21  ;;  %v1634_v21 = vrot.slane %v2684_v22, %v1633_v16 }
 0x8e6   : > { %2301 = vmatprep.subr.bf16.mxu0 %v2500_v17 }
 0x9a0   : > { %v2284_v23 = vpop.f32.mrf.mxu0 }
 0x9a2   : > { %v1496_v24 = vpop.f32.mrf.mxu0 }
 0x9a3   : > { %v2388_v25 = vpack.i.bf16 %v2284_v23, %v1496_v24  ;;  %v1639_v23 = vsub.s32 3, %v2680_v20  ;;  %v2405_v20 = vld [vmem:[%s2647_s19 + $0x30] sm:$0xff]  }
 0x9a5   : > { %2389 = vrot.lane.b32.xlu0 %v2388_v25, %s2516_s2  ;;  %v1640_v27 = vrot.slane %v2684_v22, %v1639_v23  ;;  %v2407_v22 = vld [vmem:[%s2647_s19 + $0x20] sm:$0xff]  }
 0xa17   : > { %v2390_v52 = vpop.permute.xlu0 %2389 }
 0xa18   : > { %v2392_v31 = vunpack.i.h.bf16 %v2390_v52  ;;  %v2391_v32 = vunpack.i.l.bf16 %v2390_v52  ;;  %v2404_v52 = vld [vmem:[%s2647_s19 + $0x38] sm:$0xff]  }
 0xa1a   : > { %v1535_v35 = vsel %vm1533_vm7, %v1532_v34, %v2392_v31  ;;  %v1534_v36 = vsel %vm1533_vm7, %v1531_v33, %v2391_v32  ;;  %v2409_v31 = vld [vmem:[%s2647_s19 + $0x10] sm:$0xff]   ;;  %v2410_v32 = vld [vmem:[%s2647_s19 + $0x8] sm:$0xff]   ;;  %v2411_v33 = vld [vmem:[%s2647_s19] sm:$0xff]  }
 0xa1b   : > { %v1536_v37 = vpack.c.bf16 %v1535_v35, %v1534_v36 }
 0xa1d   : > { %2290 = vmatmul.mubr.msk.bf16.vlgmr.msra.gmra.mxu0 %vm537_vm1, %v1536_v37 }
 0xa1e   : > { %2317 = vmatprep.mubr.msk.bf16.mxu0 %vm2501_vm2, %v2500_v17  ;;  %2302 = vmatpush3.bf16.msra.mxu0 %v2404_v52 }
 0xa1f   : > { %2303 = vmatprep.subr.bf16.mxu0 %v2500_v17 }
 0xa22   : > { %2304 = vmatpush3.bf16.msra.mxu0 %v2405_v20 }
 0xa23   : > { %2305 = vmatprep.subr.bf16.mxu0 %v2500_v17 }
 0xa26   : > { %2306 = vmatpush3.bf16.msra.mxu0 %v2406_v30 }
 0xa27   : > { %2307 = vmatprep.subr.bf16.mxu0 %v2500_v17 }
 0xa2a   : > { %2308 = vmatpush3.bf16.msra.mxu0 %v2407_v22 }
 0xa2b   : > { %2309 = vmatprep.subr.bf16.mxu0 %v2500_v17 }
 0xa2e   : > { %2310 = vmatpush3.bf16.msra.mxu0 %v2408_v55 }
 0xa2f   : > { %2311 = vmatprep.subr.bf16.mxu0 %v2500_v17 }
 0xa32   : > { %2312 = vmatpush3.bf16.msra.mxu0 %v2409_v31 }
 0xa33   : > { %2313 = vmatprep.subr.bf16.mxu0 %v2500_v17 }
 0xa36   : > { %2314 = vmatpush3.bf16.msra.mxu0 %v2410_v32 }
 0xa37   : > { %2315 = vmatprep.subr.bf16.mxu0 %v2500_v17 }
 0xa3a   : > { %2316 = vmatpush3.bf16.msra.mxu0 %v2411_v33 }
 0xadd   : > { %v1590_v40 = vpop.f32.mrf.mxu0 }
 0xade   : > { %v1597_v41 = vadd.f32 %v1590_v40, %v2662_v2  ;;  %v2393_v2 = vpack.i.bf16 %v2741_v10, %v2739_v9 }
 0xadf   : > { %v2291_v42 = vpop.f32.mrf.mxu0 }
 0xae0   : > { %v2835_v43 = vadd.f32 %v1602_v39, %v1597_v41 }
 0xae1   : > { %v1593_v44 = vpop.f32.mrf.mxu0 }
 0xae2   : > { %v1598_v45 = vadd.f32 %v1593_v44, %v2664_v3  ;;  %v1605_v47 = vsel %vm537_vm1, %v2835_v43, 0.0 }
 0xae3   : > { %1606 = vadd.xlane.f32.xlu1 %v1605_v47  ;;  %v2292_v48 = vpop.f32.mrf.mxu0 }
 0xae4   : > { %v2840_v49 = vadd.f32 %v1602_v39, %v1598_v45 }
 0xae6   : > { %v1608_v51 = vsel %vm537_vm1, %v2840_v49, 0.0 }
 0xae7   : > { %1609 = vadd.xlane.f32.xlu0 %v1608_v51 }
 0xaf4   : > { %2394 = vrot.lane.b32.xlu1 %v2393_v2, %s2503_s3 }
 0xb6c   : > { %v1607_v56 = vpop.xlane.xlu1 %1606 }
 0xb6d   : > { %v1611_v57 = vmul.f32 0.03125, %v1607_v56 }
 0xb6f   : > { %v1613_v3 = vsub.f32 %v2835_v43, %v1611_v57 }
 0xb70   : > { %v2395_v58 = vpop.permute.xlu1 %2394  ;;  %v1610_v60 = vpop.xlane.xlu0 %1609 }
 0xb71   : > { %v2397_v62 = vunpack.i.h.bf16 %v2395_v58  ;;  %v2396_v59 = vunpack.i.l.bf16 %v2395_v58  ;;  %v1612_v63 = vmul.f32 0.03125, %v1610_v60  ;;  %v1615_v0 = vmul.f32 %v1613_v3, %v1613_v3 }
 0xb73   : > { %v681_v9 = vsel %vm537_vm1, %v2706_v53, %v2397_v62  ;;  %v680_v10 = vsel %vm537_vm1, %v2712_v54, %v2396_v59  ;;  %v1614_v61 = vsub.f32 %v2840_v49, %v1612_v63  ;;  %v1617_v1 = vsel %vm537_vm1, %v1615_v0, 0.0 }
 0xb74   : > { %v2170_v4 = vpack.c.bf16 %v681_v9, %v681_v9  ;;  %v2169_v5 = vpack.c.bf16 %v680_v10, %v680_v10  ;;  %1618 = vadd.xlane.f32.xlu0 %v1617_v1  ;;  %v2156_v10 = vld [vmem:[%s2642_s29 + $0x8] ss:$0 sm:$0xff]  ;;  %s2951_s29 = sld [smem:[#allocation12_spill]] (!%p2157_p8) }
 0xb75   : > { %v1616_v6 = vmul.f32 %v1614_v61, %v1614_v61 }
 0xb76   : > { %692 = vst.msk [vmem:[%s2659_s0 + $0x4] sm:$0xf] %vm690_vm8, %v2170_v4  ;;  %691 = vst.msk [vmem:[%s2659_s0] sm:$0xf] %vm690_vm8, %v2169_v5  ;;  %s2950_s0 = scalar_lea.vmem %s2925_s5, %s2608_s20 }
 0xb77   : > { %v1620_v7 = vsel %vm537_vm1, %v1616_v6, 0.0  ;;  %v2144_v34 = vld [vmem:[%s2950_s0] ss:$0 sm:$0xff] }
 0xb78   : > { %1621 = vadd.xlane.f32.xlu0 %v1620_v7 }
 0xbfd   : > { %v1619_v53 = vpop.xlane.xlu0 %1618 }
 0xbfe   : > { %v1623_v54 = vmul.f32 0.03125, %v1619_v53 }
 0xc00   : > { %v1625_v12 = vadd.f32 1e-05, %v1623_v54 }
 0xc01   : > { %v1622_v13 = vpop.xlane.xlu0 %1621 }
 0xc02   : > { %2448 = vrsqrt.f32 %v1625_v12  ;;  %v1624_v14 = vmul.f32 0.03125, %v1622_v13 }
 0xc04   : > { %v1626_v15 = vadd.f32 1e-05, %v1624_v14 }
 0xc06   : > { %2450 = vrsqrt.f32 %v1626_v15 }
 0xc0f   : > { %v2449_v18 = vpop.eup %2448 }
 0xc10   : > { %v1629_v19 = vmul.f32 %v2449_v18, %v1613_v3 }
 0xc12   : > { %v1635_v26 = vmul.f32 %v1634_v21, %v1629_v19 }
 0xc13   : > { %v2451_v24 = vpop.eup %2450 }
 0xc14   : > { %v1630_v25 = vmul.f32 %v2451_v24, %v1614_v61  ;;  %v1641_v50 = vadd.f32 %v1640_v27, %v1635_v26 }
 0xc16   : > { %v1636_v28 = vmul.f32 %v1634_v21, %v1630_v25 }
 0xc18   : > { %v1642_v29 = vadd.f32 %v1640_v27, %v1636_v28 }
 0xc1a   : > { %v1643_v46 = vpack.c.bf16 %v1642_v29, %v1641_v50 }
 0xc1c   : > { %2298 = vmatmul.mubr.msk.bf16.vlgmr.msra.gmra.mxu1 %vm537_vm1, %v1643_v46 }
 0xcdc   : > { %v1704_v35 = vpop.f32.mrf.mxu1 }
 0xcdd   : > { %v1705_v36 = vadd.f32 %v2144_v34, %v1704_v35 }
 0xcde   : > { %v2299_v37 = vpop.f32.mrf.mxu1 }
 0xcdf   : > { %v1713_v38 = vmul.f32 0.044715, %v1705_v36  ;;  %v1711_v60 = vmul.f32 0.5, %v1705_v36 }
 0xce0   : > { %v1707_v39 = vpop.f32.mrf.mxu1 }
 0xce1   : > { %v1715_v40 = vmul.f32 %v1713_v38, %v1705_v36  ;;  %v1708_v41 = vadd.f32 %v2144_v34, %v1707_v39 }
 0xce2   : > { %v2300_v42 = vpop.f32.mrf.mxu1 }
 0xce3   : > { %v1717_v44 = vmul.f32 %v1715_v40, %v1705_v36  ;;  %v1714_v45 = vmul.f32 0.044715, %v1708_v41  ;;  %v1712_v62 = vmul.f32 0.5, %v1708_v41 }
 0xce5   : > { %v1719_v47 = vadd.f32 %v1717_v44, %v1705_v36  ;;  %v1716_v48 = vmul.f32 %v1714_v45, %v1708_v41 }
 0xce7   : > { %v1721_v51 = vmul.f32 0.7978846, %v1719_v47  ;;  %v1718_v17 = vmul.f32 %v1716_v48, %v1708_v41 }
 0xce9   : > { %2452 = vtanh.f32 %v1721_v51  ;;  %v1720_v2 = vadd.f32 %v1718_v17, %v1708_v41 }
 0xceb   : > { %v1722_v56 = vmul.f32 0.7978846, %v1720_v2 }
 0xced   : > { %2454 = vtanh.f32 %v1722_v56 }
 0xcf6   : > { %v2453_v57 = vpop.eup %2452 }
 0xcf7   : > { %v1725_v3 = vadd.f32 1.0, %v2453_v57 }
 0xcf9   : > { %v1727_v63 = vmul.f32 %v1725_v3, %v1711_v60 }
 0xcfa   : > { %v2455_v58 = vpop.eup %2454 }
 0xcfb   : > { %v1726_v59 = vadd.f32 1.0, %v2455_v58 }
 0xcfd   : > { %v1728_v0 = vmul.f32 %v1726_v59, %v1712_v62 }
 0xcff   : > { %v1729_v9 = vpack.c.bf16 %v1728_v0, %v1727_v63 }
 0xd01   : > { %2318 = vmatmul.mubr.bf16.vlgmr.msra.gmra.mxu0 %v1729_v9 }
 0xdc1   : > { %v1828_v61 = vpop.f32.mrf.mxu0 }
 0xdc2   : > { %v1835_v1 = vadd.f32 %v1828_v61, %v2835_v43 }
 0xdc3   : > { %v2319_v4 = vpop.f32.mrf.mxu0 }
 0xdc4   : > { %v1841_v5 = vadd.f32 %v2156_v10, %v1835_v1 }
 0xdc5   : > { %v1831_v6 = vpop.f32.mrf.mxu0 }
 0xdc6   : > { %1843 = vst.msk [vmem:[#allocation2] sm:$0xff] %vm537_vm1, %v1841_v5  ;;  %v1836_v7 = vadd.f32 %v1831_v6, %v2840_v49  ;;  %1848 = sbr.rel (%p2157_p8) target bundleno = 3844 (0xf04), region = 64 }
 0xdc7   : > { %v2320_v8 = vpop.f32.mrf.mxu0 }
 0xdc8   : > { %v1842_v11 = vadd.f32 %v2156_v10, %v1836_v7 }
 0xdca   : > { %1844 = vst.msk [vmem:[#allocation2 + $0x8] sm:$0xff] %vm537_vm1, %v1842_v11 }
 0xdcb   : > { %v1851_v53 = vsel %vm537_vm1, %v1841_v5, 0.0  ;;  %v1854_v54 = vsel %vm537_vm1, %v1842_v11, 0.0  ;;  %v2158_v29 = vld [vmem:[%s2951_s29] ss:$0 sm:$0xff]  ;;  %v2159_v52 = vld [vmem:[%s2951_s29 + $0x1] ss:$0 sm:$0xff] }
 0xdcc   : > { %1852 = vadd.xlane.f32.xlu0 %v1851_v53 }
 0xdd0   : > { %1855 = vadd.xlane.f32.xlu0 %v1854_v54 }
 0xe55   : > { %v1853_v43 = vpop.xlane.xlu0 %1852 }
 0xe56   : > { %v1857_v12 = vmul.f32 0.03125, %v1853_v43 }
 0xe58   : > { %v1859_v13 = vsub.f32 %v1841_v5, %v1857_v12 }
 0xe59   : > { %v1856_v14 = vpop.xlane.xlu0 %1855 }
 0xe5a   : > { %v1858_v15 = vmul.f32 0.03125, %v1856_v14  ;;  %v1861_v16 = vmul.f32 %v1859_v13, %v1859_v13 }
 0xe5c   : > { %v1860_v49 = vsub.f32 %v1842_v11, %v1858_v15  ;;  %v1863_v18 = vsel %vm537_vm1, %v1861_v16, 0.0 }
 0xe5d   : > { %1864 = vadd.xlane.f32.xlu1 %v1863_v18 }
 0xe5e   : > { %v1862_v19 = vmul.f32 %v1860_v49, %v1860_v49 }
 0xe60   : > { %v1866_v21 = vsel %vm537_vm1, %v1862_v19, 0.0 }
 0xe61   : > { %1867 = vadd.xlane.f32.xlu1 %v1866_v21 }
 0xee6   : > { %v1865_v23 = vpop.xlane.xlu1 %1864 }
 0xee7   : > { %v1869_v24 = vmul.f32 0.03125, %v1865_v23 }
 0xee9   : > { %v1871_v25 = vadd.f32 1e-05, %v1869_v24 }
 0xeea   : > { %v1868_v26 = vpop.xlane.xlu1 %1867 }
 0xeeb   : > { %2456 = vrsqrt.f32 %v1871_v25  ;;  %v1870_v27 = vmul.f32 0.03125, %v1868_v26 }
 0xeed   : > { %v1872_v28 = vadd.f32 1e-05, %v1870_v27 }
 0xeef   : > { %2458 = vrsqrt.f32 %v1872_v28 }
 0xef8   : > { %v2457_v50 = vpop.eup %2456 }
 0xef9   : > { %v1875_v46 = vmul.f32 %v2457_v50, %v1859_v13 }
 0xefb   : > { %v1881_v20 = vmul.f32 %v2158_v29, %v1875_v46 }
 0xefc   : > { %v2459_v30 = vpop.eup %2458 }
 0xefd   : > { %v1887_v22 = vadd.f32 %v2159_v52, %v1881_v20  ;;  %v1876_v55 = vmul.f32 %v2459_v30, %v1860_v49 }
 0xeff   : > { %1889 = vst.msk [vmem:[%s2652_s15] sm:$0xff] %vm537_vm1, %v1887_v22  ;;  %v1882_v31 = vmul.f32 %v2158_v29, %v1876_v55 }
 0xf01   : > { %v1888_v32 = vadd.f32 %v2159_v52, %v1882_v31 }
 0xf03   : > { %1890 = vst.msk [vmem:[%s2652_s15 + $0x8] sm:$0xff] %vm537_vm1, %v1888_v32 }
 0xf04 PF: > { %s2952_s4 = sld [smem:[#allocation5_spill]] }
 0xf05   : > { %s2953_s13 = sld [smem:[#allocation3_spill]] }
 0xf06   : > { %s2954_s14 = sld [smem:[#allocation4_spill]] }
 0xf07   : > { %s2955_s15 = sld [smem:[#allocation6_spill]] }
 0xf08   : > { %s2956_s16 = sld [smem:[#allocation7_spill]] }
 0xf0a   : > { %s21_s17 = sadd.s32 1, %s2952_s4  }
 0xf0b   : > { %p18_p9 = scmp.ge.s32.totalorder %s21_s17, 6  }
 0xf0d   :  { %20 = sbr.rel (!%p18_p9) target bundleno = 6 (0x6), region = 127 }

</bundles_post_ra>
